<compile_context>
chip_gen: v6e
topology: v6e:2x2x1
jax: 0.10.0
libtpu: 0.0.40
codegen_flags: <defaults>
</compile_context>

<pallas_src>
import jax
import jax.numpy as jnp
import numpy as np
from jax.experimental import pallas as pl
from jax.experimental.pallas import tpu as pltpu


def _round_up(v, m):
    return (v + m - 1) // m * m


def _pad_to(a, shape):
    pads = [(0, s - d) for d, s in zip(a.shape, shape)]
    return jnp.pad(a, pads)


def fluorescence_kernel(x_ref, mask_ref,
                        wconv_ref, bconv_ref,
                        wemb_ref, bemb_ref,
                        wdec_ref, bdec_ref,
                        out_ref):
    # x:    (TB, L+K-1, C)  masked, "same"-padded raw input window (compute dtype)
    # mask: (TB, L, 1)      validity mask (f32)
    # wconv:(K, C, Hp), bconv:(1, Hp)
    # wemb: (Hp, Ep),   bemb: (1, Ep)
    # wdec: (1, Ep),    bdec: (1, 1)
    # out:  (TB, 1)
    TB, Lp, C = x_ref.shape
    K, _, Hp = wconv_ref.shape
    Ep = wemb_ref.shape[1]
    L = Lp - (K - 1)

    # MaskedConv1d as K unrolled, shifted matmuls accumulated in f32
    # (in-kernel im2col; batch fused into the MXU M dimension).
    h = jnp.dot(x_ref[:, 0:L, :].reshape(TB * L, C), wconv_ref[0],
                preferred_element_type=jnp.float32)
    for k in range(1, K):                                    # static unroll, K is small
        h = h + jnp.dot(x_ref[:, k:k + L, :].reshape(TB * L, C), wconv_ref[k],
                        preferred_element_type=jnp.float32)

    # Conv bias + ReLU, then the second mask (broadcast over channels).
    m2 = mask_ref[...].reshape(TB * L, 1)
    h = jnp.maximum(h + bconv_ref[...], 0.0) * m2            # (TB*L, Hp) f32

    # LengthMaxPool1D linear + ReLU.
    e = jnp.dot(h.astype(wemb_ref.dtype), wemb_ref[...],
                preferred_element_type=jnp.float32)
    e = jnp.maximum(e + bemb_ref[...], 0.0)                  # (TB*L, Ep) f32

    # Max over the length axis (masked positions included, matching torch.max(dim=1)).
    pooled = jnp.max(e.reshape(TB, L, Ep), axis=1)           # (TB, Ep)

    # Decoder: VPU multiply + lane reduce (avoids a 1-column MXU matmul).
    out = jnp.sum(pooled * wdec_ref[...], axis=-1, keepdims=True) + bdec_ref[...]
    out_ref[...] = out.astype(out_ref.dtype)                 # (TB, 1)


def fluorescence_forward(x, mask, params, *, compute_dtype=jnp.bfloat16,
                         block_batch=128):
    """x: (N, L, n_tokens), mask: (N, L). Returns (N, 1) float32."""
    N, L, C = x.shape
    K, _, H = params["w_conv"].shape
    E = params["w_emb"].shape[1]
    pad = (K - 1) // 2
    Lp = L + 2 * pad            # TODO(synk): assumes odd kernel_size ("same" conv), as in the spec.

    Hp = _round_up(H, 128)
    Ep = _round_up(E, 128)

    # Batch tile: big enough to amortize grid-step overhead, clamped so small batches
    # don't pay for padded garbage rows.
    TB = _round_up(min(block_batch, _round_up(N, 8)), 8)
    Np = _round_up(N, TB)
    nblk = Np // TB

    # First mask + "same" padding on the XLA side (cheap; channel dim stays unpadded in HBM).
    m = mask.astype(jnp.float32)[:, :, None]                 # (N, L, 1)
    xm = x.astype(jnp.float32) * m
    xpad = jnp.pad(xm, ((0, 0), (pad, pad), (0, 0)))         # (N, Lp, C)

    xpad = _pad_to(xpad, (Np, Lp, C)).astype(compute_dtype)
    m = _pad_to(m, (Np, L, 1))
    w_conv = _pad_to(params["w_conv"], (K, C, Hp)).astype(compute_dtype)
    b_conv = _pad_to(params["b_conv"], (1, Hp)).astype(jnp.float32)
    w_emb = _pad_to(params["w_emb"], (Hp, Ep)).astype(compute_dtype)
    b_emb = _pad_to(params["b_emb"], (1, Ep)).astype(jnp.float32)
    w_dec = _pad_to(params["w_dec"].T, (1, Ep)).astype(jnp.float32)   # (1, Ep)
    b_dec = params["b_dec"].astype(jnp.float32)                       # (1, 1)

    # VMEM budget from the actual (double-buffered) block sizes + temporaries, +50% headroom.
    cbytes = jnp.dtype(compute_dtype).itemsize

    def _tile_bytes(shape, itemsize):
        s = (1, 1) + tuple(int(d) for d in shape)
        lead = 1
        for d in s[:-2]:
            lead *= d
        return lead * _round_up(s[-2], 8) * _round_up(s[-1], 128) * itemsize

    block_bytes = (_tile_bytes((TB, Lp, C), cbytes) +
                   _tile_bytes((TB, L, 1), 4) +
                   _tile_bytes((K, C, Hp), cbytes) +
                   _tile_bytes((1, Hp), 4) +
                   _tile_bytes((Hp, Ep), cbytes) +
                   _tile_bytes((1, Ep), 4) +
                   _tile_bytes((1, Ep), 4) +
                   _tile_bytes((1, 1), 4) +
                   _tile_bytes((TB, 1), 4))
    temp_bytes = (2 * TB * L * Hp * 4 + 2 * TB * L * Ep * 4 +   # h, e (f32)
                  2 * TB * L * 128 * (4 + cbytes) +             # tap slices / casts
                  TB * L * 128 * 4 + TB * Ep * 4)               # mask broadcast, pooled
    vmem_limit = int(1.5 * (2 * block_bytes + temp_bytes)) + (4 << 20)
    vmem_limit = max(16 << 20, min(vmem_limit, 64 << 20))       # stay within v7x's 64 MiB/TC

    out = pl.pallas_call(
        fluorescence_kernel,
        out_shape=jax.ShapeDtypeStruct((Np, 1), jnp.float32),
        grid=(nblk,),
        in_specs=[
            pl.BlockSpec((TB, Lp, C), lambda i: (i, 0, 0)),    # raw input window, blocked over batch
            pl.BlockSpec((TB, L, 1), lambda i: (i, 0, 0)),     # mask, blocked over batch
            pl.BlockSpec((K, C, Hp), lambda i: (0, 0, 0)),     # weights: resident
            pl.BlockSpec((1, Hp), lambda i: (0, 0)),
            pl.BlockSpec((Hp, Ep), lambda i: (0, 0)),
            pl.BlockSpec((1, Ep), lambda i: (0, 0)),
            pl.BlockSpec((1, Ep), lambda i: (0, 0)),
            pl.BlockSpec((1, 1), lambda i: (0, 0)),
        ],
        out_specs=pl.BlockSpec((TB, 1), lambda i: (i, 0)),
        compiler_params=pltpu.CompilerParams(
            dimension_semantics=("parallel",),                 # megacore on v7x
            vmem_limit_bytes=vmem_limit),
    )(xpad, m, w_conv, b_conv, w_emb, b_emb, w_dec, b_dec)
    return out[:N]


def reference_forward(x, mask, params):
    """Pure-JAX reference matching the PyTorch forward semantics."""
    N, L, _ = x.shape
    K, _, H = params["w_conv"].shape
    pad = (K - 1) // 2
    m = mask[:, :, None].astype(jnp.float32)
    xpad = jnp.pad(x.astype(jnp.float32) * m, ((0, 0), (pad, pad), (0, 0)))
    conv = jnp.zeros((N, L, H), jnp.float32) + params["b_conv"]
    for k in range(K):
        conv = conv + jnp.einsum("nlc,ch->nlh", xpad[:, k:k + L, :],
                                 params["w_conv"][k],
                                 preferred_element_type=jnp.float32)
    h = jax.nn.relu(conv) * m
    e = jax.nn.relu(jnp.einsum("nlh,ho->nlo", h, params["w_emb"],
                               preferred_element_type=jnp.float32)
                    + params["b_emb"])
    pooled = jnp.max(e, axis=1)
    return pooled @ params["w_dec"] + params["b_dec"]


def init_params(key, n_tokens, kernel_size, input_size):
    H = input_size
    ks = jax.random.split(key, 6)
    return {
        # MaskedConv1d(n_tokens -> input_size, kernel_size), stored as (K, C_in, H)
        "w_conv": 0.1 * jax.random.normal(ks[0], (kernel_size, n_tokens, H), jnp.float32),
        "b_conv": 0.1 * jax.random.normal(ks[1], (1, H), jnp.float32),
        # LengthMaxPool1D linear: input_size -> 2*input_size
        "w_emb": 0.1 * jax.random.normal(ks[2], (H, 2 * H), jnp.float32),
        "b_emb": 0.1 * jax.random.normal(ks[3], (1, 2 * H), jnp.float32),
        # decoder: nn.Linear(2*input_size, 1)
        "w_dec": 0.1 * jax.random.normal(ks[4], (2 * H, 1), jnp.float32),
        "b_dec": 0.1 * jax.random.normal(ks[5], (1, 1), jnp.float32),
    }


if __name__ == "__main__":
    # Shapes consistent with the module: seq len=16, n_tokens=8, kernel_size=5, hidden=32.
    L, n_tokens, K, H = 16, 8, 5, 32
    key = jax.random.PRNGKey(0)
    kx, kp, kx2, kl2 = jax.random.split(key, 4)
    params = init_params(kp, n_tokens, K, H)

    # --- test 1: spec shapes (N=2), default bf16 operands (f32 accumulation) ---
    N = 2
    x = jax.random.normal(kx, (N, L, n_tokens), jnp.float32)
    lengths = jnp.array([12, 16], jnp.int32)
    mask = (jnp.arange(L)[None, :] < lengths[:, None]).astype(jnp.float32)
    ref = reference_forward(x, mask, params)

    out_bf16 = jax.block_until_ready(fluorescence_forward(x, mask, params))
    assert out_bf16.shape == (N, 1)
    assert np.allclose(np.asarray(out_bf16), np.asarray(ref), rtol=1e-1, atol=5e-2)

    # --- test 2: f32 operands, tight tolerance ---
    out_f32 = jax.block_until_ready(
        fluorescence_forward(x, mask, params, compute_dtype=jnp.float32))
    assert np.allclose(np.asarray(out_f32), np.asarray(ref), rtol=1e-4, atol=1e-4)

    # --- test 3: larger batch exercising a multi-step parallel batch grid (3 steps) ---
    N2 = 20
    x2 = jax.random.normal(kx2, (N2, L, n_tokens), jnp.float32)
    lengths2 = jax.random.randint(kl2, (N2,), 4, L + 1)
    mask2 = (jnp.arange(L)[None, :] < lengths2[:, None]).astype(jnp.float32)
    ref2 = reference_forward(x2, mask2, params)

    out2 = jax.block_until_ready(
        fluorescence_forward(x2, mask2, params, block_batch=8))
    assert out2.shape == (N2, 1)
    assert np.allclose(np.asarray(out2), np.asarray(ref2), rtol=1e-1, atol=5e-2)

    out2_f32 = jax.block_until_ready(
        fluorescence_forward(x2, mask2, params, block_batch=8,
                             compute_dtype=jnp.float32))
    assert np.allclose(np.asarray(out2_f32), np.asarray(ref2), rtol=1e-4, atol=1e-4)

    print("KERNEL_OK")
</pallas_src>

<mosaic_0001>
module attributes {stable_mosaic.version = 11 : i64} {
  func.func @fluorescence_kernel(%arg0: i32, %arg1: memref<8x20x8xbf16, #tpu.memory_space<vmem>>, %arg2: memref<8x16x1xf32, #tpu.memory_space<vmem>>, %arg3: memref<5x8x128xbf16, #tpu.memory_space<vmem>>, %arg4: memref<1x128xf32, #tpu.memory_space<vmem>>, %arg5: memref<128x128xbf16, #tpu.memory_space<vmem>>, %arg6: memref<1x128xf32, #tpu.memory_space<vmem>>, %arg7: memref<1x128xf32, #tpu.memory_space<vmem>>, %arg8: memref<1x1xf32, #tpu.memory_space<vmem>>, %arg9: memref<8x1xf32, #tpu.memory_space<vmem>>) attributes {dimension_semantics = [#tpu.dimension_semantics<parallel>], iteration_bounds = array<i64: 1>, scalar_prefetch = 0 : i64, scratch_operands = 0 : i64, tpu.core_type = #tpu.core_type<tc>, window_params = [{transform_indices = @transform_0, window_bounds = array<i64: 8, 20, 8>}, {transform_indices = @transform_1, window_bounds = array<i64: 8, 16, 1>}, {pipeline_mode = #tpu.pipeline_mode<synchronous>, transform_indices = @transform_2, window_bounds = array<i64: 5, 8, 128>}, {pipeline_mode = #tpu.pipeline_mode<synchronous>, transform_indices = @transform_3, window_bounds = array<i64: 1, 128>}, {pipeline_mode = #tpu.pipeline_mode<synchronous>, transform_indices = @transform_4, window_bounds = array<i64: 128, 128>}, {pipeline_mode = #tpu.pipeline_mode<synchronous>, transform_indices = @transform_5, window_bounds = array<i64: 1, 128>}, {pipeline_mode = #tpu.pipeline_mode<synchronous>, transform_indices = @transform_6, window_bounds = array<i64: 1, 128>}, {pipeline_mode = #tpu.pipeline_mode<synchronous>, transform_indices = @transform_7, window_bounds = array<i64: 1, 1>}, {transform_indices = @transform_8, window_bounds = array<i64: 8, 1>}]} {
    %c0 = arith.constant 0 : index
    %c0_0 = arith.constant 0 : index
    %c0_1 = arith.constant 0 : index
    %0 = vector.load %arg1[%c0, %c0_0, %c0_1] : memref<8x20x8xbf16, #tpu.memory_space<vmem>>, vector<8x16x8xbf16>
    %1 = vector.shape_cast %0 : vector<8x16x8xbf16> to vector<128x8xbf16>
    %c0_2 = arith.constant 0 : index
    %c0_3 = arith.constant 0 : index
    %c0_4 = arith.constant 0 : index
    %2 = vector.load %arg3[%c0_2, %c0_3, %c0_4] : memref<5x8x128xbf16, #tpu.memory_space<vmem>>, vector<1x8x128xbf16>
    %3 = vector.shape_cast %2 : vector<1x8x128xbf16> to vector<8x128xbf16>
    %cst = arith.constant dense<0.000000e+00> : vector<128x128xf32>
    %4 = tpu.matmul %1, %3, %cst {dimension_numbers = #tpu.dot_dimension_numbers<[1], [0], [0], [1], [0, 0, 1, 1], [], []>} : vector<128x8xbf16>, vector<8x128xbf16>, vector<128x128xf32> -> vector<128x128xf32>
    %c0_5 = arith.constant 0 : index
    %c1 = arith.constant 1 : index
    %c0_6 = arith.constant 0 : index
    %5 = vector.load %arg1[%c0_5, %c1, %c0_6] : memref<8x20x8xbf16, #tpu.memory_space<vmem>>, vector<8x16x8xbf16>
    %6 = vector.shape_cast %5 : vector<8x16x8xbf16> to vector<128x8xbf16>
    %c1_7 = arith.constant 1 : index
    %c0_8 = arith.constant 0 : index
    %c0_9 = arith.constant 0 : index
    %7 = vector.load %arg3[%c1_7, %c0_8, %c0_9] : memref<5x8x128xbf16, #tpu.memory_space<vmem>>, vector<1x8x128xbf16>
    %8 = vector.shape_cast %7 : vector<1x8x128xbf16> to vector<8x128xbf16>
    %cst_10 = arith.constant dense<0.000000e+00> : vector<128x128xf32>
    %9 = tpu.matmul %6, %8, %cst_10 {dimension_numbers = #tpu.dot_dimension_numbers<[1], [0], [0], [1], [0, 0, 1, 1], [], []>} : vector<128x8xbf16>, vector<8x128xbf16>, vector<128x128xf32> -> vector<128x128xf32>
    %10 = arith.addf %4, %9 : vector<128x128xf32>
    %c0_11 = arith.constant 0 : index
    %c2 = arith.constant 2 : index
    %c0_12 = arith.constant 0 : index
    %11 = vector.load %arg1[%c0_11, %c2, %c0_12] : memref<8x20x8xbf16, #tpu.memory_space<vmem>>, vector<8x16x8xbf16>
    %12 = vector.shape_cast %11 : vector<8x16x8xbf16> to vector<128x8xbf16>
    %c2_13 = arith.constant 2 : index
    %c0_14 = arith.constant 0 : index
    %c0_15 = arith.constant 0 : index
    %13 = vector.load %arg3[%c2_13, %c0_14, %c0_15] : memref<5x8x128xbf16, #tpu.memory_space<vmem>>, vector<1x8x128xbf16>
    %14 = vector.shape_cast %13 : vector<1x8x128xbf16> to vector<8x128xbf16>
    %cst_16 = arith.constant dense<0.000000e+00> : vector<128x128xf32>
    %15 = tpu.matmul %12, %14, %cst_16 {dimension_numbers = #tpu.dot_dimension_numbers<[1], [0], [0], [1], [0, 0, 1, 1], [], []>} : vector<128x8xbf16>, vector<8x128xbf16>, vector<128x128xf32> -> vector<128x128xf32>
    %16 = arith.addf %10, %15 : vector<128x128xf32>
    %c0_17 = arith.constant 0 : index
    %c3 = arith.constant 3 : index
    %c0_18 = arith.constant 0 : index
    %17 = vector.load %arg1[%c0_17, %c3, %c0_18] : memref<8x20x8xbf16, #tpu.memory_space<vmem>>, vector<8x16x8xbf16>
    %18 = vector.shape_cast %17 : vector<8x16x8xbf16> to vector<128x8xbf16>
    %c3_19 = arith.constant 3 : index
    %c0_20 = arith.constant 0 : index
    %c0_21 = arith.constant 0 : index
    %19 = vector.load %arg3[%c3_19, %c0_20, %c0_21] : memref<5x8x128xbf16, #tpu.memory_space<vmem>>, vector<1x8x128xbf16>
    %20 = vector.shape_cast %19 : vector<1x8x128xbf16> to vector<8x128xbf16>
    %cst_22 = arith.constant dense<0.000000e+00> : vector<128x128xf32>
    %21 = tpu.matmul %18, %20, %cst_22 {dimension_numbers = #tpu.dot_dimension_numbers<[1], [0], [0], [1], [0, 0, 1, 1], [], []>} : vector<128x8xbf16>, vector<8x128xbf16>, vector<128x128xf32> -> vector<128x128xf32>
    %22 = arith.addf %16, %21 : vector<128x128xf32>
    %c0_23 = arith.constant 0 : index
    %c4 = arith.constant 4 : index
    %c0_24 = arith.constant 0 : index
    %23 = vector.load %arg1[%c0_23, %c4, %c0_24] : memref<8x20x8xbf16, #tpu.memory_space<vmem>>, vector<8x16x8xbf16>
    %24 = vector.shape_cast %23 : vector<8x16x8xbf16> to vector<128x8xbf16>
    %c4_25 = arith.constant 4 : index
    %c0_26 = arith.constant 0 : index
    %c0_27 = arith.constant 0 : index
    %25 = vector.load %arg3[%c4_25, %c0_26, %c0_27] : memref<5x8x128xbf16, #tpu.memory_space<vmem>>, vector<1x8x128xbf16>
    %26 = vector.shape_cast %25 : vector<1x8x128xbf16> to vector<8x128xbf16>
    %cst_28 = arith.constant dense<0.000000e+00> : vector<128x128xf32>
    %27 = tpu.matmul %24, %26, %cst_28 {dimension_numbers = #tpu.dot_dimension_numbers<[1], [0], [0], [1], [0, 0, 1, 1], [], []>} : vector<128x8xbf16>, vector<8x128xbf16>, vector<128x128xf32> -> vector<128x128xf32>
    %28 = arith.addf %22, %27 : vector<128x128xf32>
    %c0_29 = arith.constant 0 : index
    %c0_30 = arith.constant 0 : index
    %c0_31 = arith.constant 0 : index
    %29 = vector.load %arg2[%c0_29, %c0_30, %c0_31] : memref<8x16x1xf32, #tpu.memory_space<vmem>>, vector<8x16x1xf32>
    %30 = vector.shape_cast %29 : vector<8x16x1xf32> to vector<128x1xf32>
    %c0_32 = arith.constant 0 : index
    %c0_33 = arith.constant 0 : index
    %31 = vector.load %arg4[%c0_32, %c0_33] : memref<1x128xf32, #tpu.memory_space<vmem>>, vector<1x128xf32>
    %32 = vector.broadcast %31 : vector<1x128xf32> to vector<128x128xf32>
    %33 = arith.addf %28, %32 : vector<128x128xf32>
    %cst_34 = arith.constant 0.000000e+00 : f32
    %34 = vector.broadcast %cst_34 : f32 to vector<128x128xf32>
    %35 = arith.maximumf %33, %34 : vector<128x128xf32>
    %36 = vector.broadcast %30 : vector<128x1xf32> to vector<128x128xf32>
    %37 = arith.mulf %35, %36 : vector<128x128xf32>
    %38 = arith.truncf %37 : vector<128x128xf32> to vector<128x128xbf16>
    %c0_35 = arith.constant 0 : index
    %c0_36 = arith.constant 0 : index
    %39 = vector.load %arg5[%c0_35, %c0_36] : memref<128x128xbf16, #tpu.memory_space<vmem>>, vector<128x128xbf16>
    %cst_37 = arith.constant dense<0.000000e+00> : vector<128x128xf32>
    %40 = tpu.matmul %38, %39, %cst_37 {dimension_numbers = #tpu.dot_dimension_numbers<[1], [0], [0], [1], [0, 0, 1, 1], [], []>} : vector<128x128xbf16>, vector<128x128xbf16>, vector<128x128xf32> -> vector<128x128xf32>
    %c0_38 = arith.constant 0 : index
    %c0_39 = arith.constant 0 : index
    %41 = vector.load %arg6[%c0_38, %c0_39] : memref<1x128xf32, #tpu.memory_space<vmem>>, vector<1x128xf32>
    %42 = vector.broadcast %41 : vector<1x128xf32> to vector<128x128xf32>
    %43 = arith.addf %40, %42 : vector<128x128xf32>
    %cst_40 = arith.constant 0.000000e+00 : f32
    %44 = vector.broadcast %cst_40 : f32 to vector<128x128xf32>
    %45 = arith.maximumf %43, %44 : vector<128x128xf32>
    %46 = vector.shape_cast %45 : vector<128x128xf32> to vector<8x16x128xf32>
    %cst_41 = arith.constant dense<0xFF800000> : vector<8x128xf32>
    %47 = vector.multi_reduction <maximumf>, %46, %cst_41 [1] : vector<8x16x128xf32> to vector<8x128xf32>
    %c0_42 = arith.constant 0 : index
    %c0_43 = arith.constant 0 : index
    %48 = vector.load %arg7[%c0_42, %c0_43] : memref<1x128xf32, #tpu.memory_space<vmem>>, vector<1x128xf32>
    %49 = vector.broadcast %48 : vector<1x128xf32> to vector<8x128xf32>
    %50 = arith.mulf %47, %49 : vector<8x128xf32>
    %cst_44 = arith.constant dense<0.000000e+00> : vector<8xf32>
    %51 = vector.multi_reduction <add>, %50, %cst_44 [1] : vector<8x128xf32> to vector<8xf32>
    %52 = vector.shape_cast %51 : vector<8xf32> to vector<8x1xf32>
    %c0_45 = arith.constant 0 : index
    %c0_46 = arith.constant 0 : index
    %53 = vector.load %arg8[%c0_45, %c0_46] : memref<1x1xf32, #tpu.memory_space<vmem>>, vector<1x1xf32>
    %54 = vector.broadcast %53 : vector<1x1xf32> to vector<8x1xf32>
    %55 = arith.addf %52, %54 : vector<8x1xf32>
    %c0_47 = arith.constant 0 : index
    %c0_48 = arith.constant 0 : index
    %56 = vector.load %arg9[%c0_47, %c0_48] : memref<8x1xf32, #tpu.memory_space<vmem>>, vector<8x1xf32>
    tpu.vector_store %arg9[%c0_47, %c0_48], %55 {strides = array<i32>} : memref<8x1xf32, #tpu.memory_space<vmem>>, vector<8x1xf32>,
    return
  }
  func.func @transform_0(%arg0: i32) -> (i32, i32, i32) {
    %c0_i32 = arith.constant 0 : i32
    %c0_i32_0 = arith.constant 0 : i32
    %c0_i32_1 = arith.constant 0 : i32
    return %arg0, %c0_i32, %c0_i32_0 : i32, i32, i32
  }
  func.func @transform_1(%arg0: i32) -> (i32, i32, i32) {
    %c0_i32 = arith.constant 0 : i32
    %c0_i32_0 = arith.constant 0 : i32
    %c0_i32_1 = arith.constant 0 : i32
    return %arg0, %c0_i32, %c0_i32_0 : i32, i32, i32
  }
  func.func @transform_2(%arg0: i32) -> (i32, i32, i32) {
    %c0_i32 = arith.constant 0 : i32
    %c0_i32_0 = arith.constant 0 : i32
    %c0_i32_1 = arith.constant 0 : i32
    %c0_i32_2 = arith.constant 0 : i32
    return %c0_i32, %c0_i32_0, %c0_i32_1 : i32, i32, i32
  }
  func.func @transform_3(%arg0: i32) -> (i32, i32) {
    %c0_i32 = arith.constant 0 : i32
    %c0_i32_0 = arith.constant 0 : i32
    %c0_i32_1 = arith.constant 0 : i32
    return %c0_i32, %c0_i32_0 : i32, i32
  }
  func.func @transform_4(%arg0: i32) -> (i32, i32) {
    %c0_i32 = arith.constant 0 : i32
    %c0_i32_0 = arith.constant 0 : i32
    %c0_i32_1 = arith.constant 0 : i32
    return %c0_i32, %c0_i32_0 : i32, i32
  }
  func.func @transform_5(%arg0: i32) -> (i32, i32) {
    %c0_i32 = arith.constant 0 : i32
    %c0_i32_0 = arith.constant 0 : i32
    %c0_i32_1 = arith.constant 0 : i32
    return %c0_i32, %c0_i32_0 : i32, i32
  }
  func.func @transform_6(%arg0: i32) -> (i32, i32) {
    %c0_i32 = arith.constant 0 : i32
    %c0_i32_0 = arith.constant 0 : i32
    %c0_i32_1 = arith.constant 0 : i32
    return %c0_i32, %c0_i32_0 : i32, i32
  }
  func.func @transform_7(%arg0: i32) -> (i32, i32) {
    %c0_i32 = arith.constant 0 : i32
    %c0_i32_0 = arith.constant 0 : i32
    %c0_i32_1 = arith.constant 0 : i32
    return %c0_i32, %c0_i32_0 : i32, i32
  }
  func.func @transform_8(%arg0: i32) -> (i32, i32) {
    %c0_i32 = arith.constant 0 : i32
    %c0_i32_0 = arith.constant 0 : i32
    return %arg0, %c0_i32 : i32, i32
  }
}

</mosaic_0001>

<bundles_post_ra>
// kernel: tpu_custom_call.1
= control target key start
LH: loop header
LB: loop body
LE: loop exit
PB: predicated region body
PF: predicated region fallthrough
CT: control target
= control target key end

     0   :  { %vm303_vm0 = vcmask 1043456   ;;  %vm57_vm1 = vsmask.f32 3328  ;;  %vm58_vm2 = vsmask.f32 7440  ;;  %vm278_vm3 = vcmask 64512   ;;  %s3046_s2 = inlined_call_operand.vmem [shape: bf16[5,8,128], index: 2, kind: input, shape index: {}]   ;;  %s3047_s0 = inlined_call_operand.vmem [shape: bf16[8,20,8], index: 0, kind: input, shape index: {}]   ;;  %s3048_s1 = inlined_call_operand.vmem [shape: f32[8,16,1], index: 1, kind: input, shape index: {}]   ;;  %s3049_s4 = inlined_call_operand.vmem [shape: bf16[128,128], index: 4, kind: input, shape index: {}]   ;;  %s3050_s3 = inlined_call_operand.vmem [shape: f32[1,128], index: 3, kind: input, shape index: {}]   ;;  %s3051_s7 = inlined_call_operand.<no memory space> [shape: f32[1,1], index: 7, kind: input, shape index: {}]   ;;  %s3052_s5 = inlined_call_operand.vmem [shape: f32[1,128], index: 5, kind: input, shape index: {}]   ;;  %s3053_s6 = inlined_call_operand.vmem [shape: f32[1,128], index: 6, kind: input, shape index: {}]   ;;  %s3054_s8 = inlined_call_operand.vmem [shape: f32[8,1], index: 8, kind: output, shape index: {}]  }
   0x1   :  { %v1887_v0 = vld [vmem:[%s3046_s2 + $0x4] sm:$0xf]  ;;  %v48_v1 = vld [vmem:[%s3046_s2] sm:$0xf]  ;;  %v2273_v6 = vld [vmem:[%s3047_s0 + $0x8] sm:$0x1] }
   0x2   :  { %v32_v2 = vld [vmem:[%s3047_s0] sm:$0xf]  ;;  %2182 = vmatprep.subr.msk.bf16.mxu0 %vm303_vm0, %v1887_v0  ;;  %v305_v3 = vsel %vm303_vm0, %v1887_v0, 0  ;;  %2183 = vmatprep.subr.msk.bf16.mxu1 %vm303_vm0, %v48_v1  ;;  %v469_v4 = vsel %vm303_vm0, %v48_v1, 0  ;;  %v2268_v5 = vld [vmem:[%s3047_s0 + $0x4] sm:$0xf]  ;;  %vm2305_vm4 = vmor %vm57_vm1, %vm58_vm2 }
   0x3   :  { %2061 = vmatpush3.bf16.msra.mxu0 %v305_v3  ;;  %2079 = vmatpush3.bf16.msra.mxu1 %v469_v4  ;;  %v61_v7 = vshrl.u32 %v32_v2, 16  ;;  %v64_v8 = vshll.u32 %v32_v2, 16  ;;  %v70_v9 = vshll.u32 %v2268_v5, 16  ;;  %v74_v10 = vshrl.u32 %v2268_v5, 16  ;;  %v1928_v11 = vld [vmem:[%s3046_s2 + $0x8] sm:$0xf] }
   0x4   :  { %v80_v12 = vshll.u32 %v2273_v6, 16  ;;  %v600_v13 = vrot.slane %v2273_v6, 5  ;;  %v1904_v14 = vcombine.low %v32_v2, %v2268_v5  ;;  %2184 = vmatprep.subr.msk.bf16.mxu0 %vm303_vm0, %v1928_v11  ;;  %v34_v15 = vld [vmem:[%s3047_s0 + $0xc] sm:$0xf]  ;;  %v2290_v16 = vld [vmem:[%s3047_s0 + $0x10] sm:$0xf] }
   0x5   :  { %v63_v17 = vrot.slane %v61_v7, 4  ;;  %v66_v18 = vrot.slane %v64_v8, 5  ;;  %v72_v19 = vrot.slane %v70_v9, 5  ;;  %v76_v20 = vrot.slane %v74_v10, 4  ;;  %v2295_v21 = vld [vmem:[%s3047_s0 + $0x14] sm:$0x1] }
   0x6   :  { %v82_v22 = vrot.slane %v80_v12, 5  ;;  %v2297_v23 = vrot.slane %v74_v10, 5  ;;  %v2299_v24 = vrot.slane %v70_v9, 6  ;;  %2080 = vmatprep.mubr.msk.bf16.mxu1 %vm278_vm3, %v1904_v14  ;;  %v85_v25 = vshrl.u32 %v34_v15, 16  ;;  %v36_v39 = vld [vmem:[%s3047_s0 + $0x18] sm:$0xf] }
   0x7   :  { %v67_v26 = vor.u32 %v66_v18, %v63_v17  ;;  %v77_v27 = vor.u32 %v76_v20, %v72_v19  ;;  %v88_v28 = vshll.u32 %v34_v15, 16  ;;  %v94_v29 = vshll.u32 %v2290_v16, 16  ;;  %v2318_v44 = vld [vmem:[%s3047_s0 + $0x1c] sm:$0xf]  ;;  %v2328_v49 = vld [vmem:[%s3047_s0 + $0x20] sm:$0x1] }
   0x8   :  { %v87_v31 = vrot.slane %v85_v25, 4  ;;  %v98_v32 = vshrl.u32 %v2290_v16, 16  ;;  %v104_v33 = vshll.u32 %v2295_v21, 16  ;;  %v607_v34 = vrot.slane %v2295_v21, 5  ;;  %v38_v58 = vld [vmem:[%s3047_s0 + $0x24] sm:$0xf] }
   0x9   :  { %v68_v35 = vrot.slane %v67_v26, 4  ;;  %v78_v36 = vrot.slane %v77_v27, 4  ;;  %v90_v37 = vrot.slane %v88_v28, 5  ;;  %v96_v38 = vrot.slane %v94_v29, 5  ;;  %v2345_v63 = vld [vmem:[%s3047_s0 + $0x28] sm:$0xf] }
   0xa   :  { %v100_v40 = vrot.slane %v98_v32, 4  ;;  %v106_v41 = vrot.slane %v104_v33, 5  ;;  %v860_v42 = vrot.slane %v98_v32, 5  ;;  %v861_v43 = vrot.slane %v94_v29, 6  ;;  %v2354_v4 = vld [vmem:[%s3047_s0 + $0x2c] sm:$0x1] }
   0xb   :  { %v73_v45 = vsel %vm2305_vm4, %v68_v35, %v72_v19  ;;  %v83_v46 = vsel %vm2305_vm4, %v78_v36, %v82_v22  ;;  %v91_v47 = vor.u32 %v90_v37, %v87_v31  ;;  %v1905_v48 = vcombine.low %v34_v15, %v2290_v16  ;;  %v40_v17 = vld [vmem:[%s3047_s0 + $0x30] sm:$0xf]  ;;  %v2371_v25 = vld [vmem:[%s3046_s2 + $0xc] sm:$0xf]  ;;  %v2378_v31 = vld [vmem:[%s3047_s0 + $0x34] sm:$0xf] }
   0xc   :  { %v1888_v50 = vcombine.low %v73_v45, %v83_v46  ;;  %v101_v51 = vor.u32 %v100_v40, %v96_v38  ;;  %v2330_v52 = vor.u32 %v861_v43, %v860_v42  ;;  %v702_v53 = vsel %vm303_vm0, %v1928_v11, 0  ;;  %2185 = vmatprep.subr.msk.bf16.mxu1 %vm303_vm0, %v2371_v25  ;;  %v2389_v37 = vld [vmem:[%s3046_s2 + $0x10] sm:$0xf]  ;;  %v2397_v40 = vld [vmem:[%s3047_s0 + $0x38] sm:$0x1] }
   0xd   :  { %v92_v54 = vrot.slane %v91_v47, 4  ;;  %2081 = vmatmul.mubr.msk.bf16.vlgmr.msra.gmra.mxu1 %vm278_vm3, %v1905_v48  ;;  %v109_v55 = vshrl.u32 %v36_v39, 16  ;;  %v112_v56 = vshll.u32 %v36_v39, 16  ;;  %v118_v57 = vshll.u32 %v2318_v44, 16  ;;  %v42_v48 = vld [vmem:[%s3047_s0 + $0x3c] sm:$0xf] }
   0xe   :  { %2062 = vmatprep.mubr.msk.bf16.mxu0 %vm278_vm3, %v1888_v50  ;;  %v102_v59 = vrot.slane %v101_v51, 4  ;;  %v864_v60 = vrot.slane %v2330_v52, 4  ;;  %v122_v61 = vshrl.u32 %v2318_v44, 16  ;;  %v128_v62 = vshll.u32 %v2328_v49, 16  ;;  %v2539_v30 = vld [vmem:[%s3047_s0 + $0x14] sm:$0x3] }
   0xf   :  { %v97_v0 = vsel %vm2305_vm4, %v92_v54, %v96_v38  ;;  %v111_v1 = vrot.slane %v109_v55, 4  ;;  %v114_v2 = vrot.slane %v112_v56, 5  ;;  %v120_v3 = vrot.slane %v118_v57, 5 }
  0x10   :  { %v107_v7 = vsel %vm2305_vm4, %v102_v59, %v106_v41  ;;  %v124_v8 = vrot.slane %v122_v61, 4  ;;  %v130_v9 = vrot.slane %v128_v62, 5  ;;  %v1906_v10 = vcombine.low %v36_v39, %v2318_v44  ;;  %v2416_v62 = vld [vmem:[%s3047_s0 + $0x40] sm:$0xf] }
  0x11   :  { %v1889_v11 = vcombine.low %v97_v0, %v107_v7  ;;  %v115_v12 = vor.u32 %v114_v2, %v111_v1  ;;  %v133_v14 = vshrl.u32 %v38_v58, 16  ;;  %v136_v15 = vshll.u32 %v38_v58, 16 }
  0x12   :  { %v125_v18 = vor.u32 %v124_v8, %v120_v3  ;;  %2084 = vmatprep.mubr.msk.bf16.mxu1 %vm278_vm3, %v1906_v10  ;;  %v142_v19 = vshll.u32 %v2345_v63, 16  ;;  %v146_v20 = vshrl.u32 %v2345_v63, 16  ;;  %v152_v22 = vshll.u32 %v2354_v4, 16 }
  0x13   :  { %2063 = vmatmul.mubr.msk.bf16.vlgmr.msra.gmra.mxu0 %vm278_vm3, %v1889_v11  ;;  %v116_v26 = vrot.slane %v115_v12, 4  ;;  %v135_v27 = vrot.slane %v133_v14, 4  ;;  %v138_v28 = vrot.slane %v136_v15, 5  ;;  %v1907_v29 = vcombine.low %v38_v58, %v2345_v63  ;;  %v44_v12 = vld [vmem:[%s3047_s0 + $0x48] sm:$0xf] }
  0x14   :  { %2097 = vmatpush3.bf16.msra.mxu0 %v702_v53  ;;  %v126_v32 = vrot.slane %v125_v18, 4  ;;  %v144_v33 = vrot.slane %v142_v19, 5  ;;  %v148_v35 = vrot.slane %v146_v20, 4  ;;  %v154_v36 = vrot.slane %v152_v22, 5 }
  0x15   :  { %v121_v38 = vsel %vm2305_vm4, %v116_v26, %v120_v3  ;;  %v139_v39 = vor.u32 %v138_v28, %v135_v27  ;;  %2085 = vmatmul.mubr.msk.bf16.gmra.mxu1 %vm278_vm3, %v1907_v29  ;;  %v157_v41 = vshrl.u32 %v40_v17, 16  ;;  %v160_v42 = vshll.u32 %v40_v17, 16  ;;  %2186 = vmatprep.subr.msk.bf16.mxu0 %vm303_vm0, %v2389_v37  ;;  %v2425_v3 = vld [vmem:[%s3047_s0 + $0x44] sm:$0x1]  ;;  %v2439_v29 = vld [vmem:[%s3047_s0 + $0x4c] sm:$0xf] }
  0x16   :  { %v131_v43 = vsel %vm2305_vm4, %v126_v32, %v130_v9  ;;  %v149_v45 = vor.u32 %v148_v35, %v144_v33  ;;  %v166_v46 = vshll.u32 %v2378_v31, 16  ;;  %v170_v47 = vshrl.u32 %v2378_v31, 16 }
  0x17   :  { %v1890_v50 = vcombine.low %v121_v38, %v131_v43  ;;  %v140_v51 = vrot.slane %v139_v39, 4  ;;  %v159_v53 = vrot.slane %v157_v41, 4  ;;  %v162_v54 = vrot.slane %v160_v42, 5 }
  0x18   :  { %v150_v55 = vrot.slane %v149_v45, 4  ;;  %v168_v56 = vrot.slane %v166_v46, 5  ;;  %v172_v58 = vrot.slane %v170_v47, 4  ;;  %v176_v59 = vshll.u32 %v2397_v40, 16  ;;  %v46_v45 = vld [vmem:[%s3047_s0 + $0x54] sm:$0xf] }
  0x19   :  { %2066 = vmatprep.mubr.msk.bf16.mxu0 %vm278_vm3, %v1890_v50  ;;  %v145_v0 = vsel %vm2305_vm4, %v140_v51, %v144_v33  ;;  %v163_v1 = vor.u32 %v162_v54, %v159_v53  ;;  %v1908_v2 = vcombine.low %v40_v17, %v2378_v31  ;;  %v181_v7 = vshrl.u32 %v42_v48, 16 }
  0x1a   :  { %v155_v8 = vsel %vm2305_vm4, %v150_v55, %v154_v36  ;;  %v173_v9 = vor.u32 %v172_v58, %v168_v56  ;;  %v178_v10 = vrot.slane %v176_v59, 5  ;;  %v184_v11 = vshll.u32 %v42_v48, 16  ;;  %v2450_v36 = vld [vmem:[%s3047_s0 + $0x50] sm:$0x1]  ;;  %v2466_v59 = vld [vmem:[%s3047_s0 + $0x58] sm:$0xf] }
  0x1b   :  { %v1891_v14 = vcombine.low %v145_v0, %v155_v8  ;;  %v164_v15 = vrot.slane %v163_v1, 4  ;;  %2088 = vmatprep.mubr.msk.bf16.mxu1 %vm278_vm3, %v1908_v2  ;;  %v183_v17 = vrot.slane %v181_v7, 4  ;;  %v190_v18 = vshll.u32 %v2416_v62, 16  ;;  %v2475_v7 = vld [vmem:[%s3047_s0 + $0x5c] sm:$0x1] }
  0x1c   :  { %v174_v22 = vrot.slane %v173_v9, 4  ;;  %v186_v26 = vrot.slane %v184_v11, 5  ;;  %v194_v27 = vshrl.u32 %v2416_v62, 16  ;;  %v200_v28 = vshll.u32 %v2425_v3, 16 }
  0x1d   :  { %2067 = vmatmul.mubr.msk.bf16.gmra.mxu0 %vm278_vm3, %v1891_v14  ;;  %v169_v32 = vsel %vm2305_vm4, %v164_v15, %v168_v56  ;;  %v192_v33 = vrot.slane %v190_v18, 5  ;;  %v1909_v35 = vcombine.low %v42_v48, %v2416_v62  ;;  %v205_v38 = vshrl.u32 %v44_v12, 16 }
  0x1e   :  { %v179_v39 = vsel %vm2305_vm4, %v174_v22, %v178_v10  ;;  %v187_v41 = vor.u32 %v186_v26, %v183_v17  ;;  %v196_v42 = vrot.slane %v194_v27, 4  ;;  %v202_v43 = vrot.slane %v200_v28, 5 }
  0x1f   :  { %v1892_v50 = vcombine.low %v169_v32, %v179_v39  ;;  %2089 = vmatmul.mubr.msk.bf16.gmra.mxu1 %vm278_vm3, %v1909_v35  ;;  %v207_v48 = vrot.slane %v205_v38, 4  ;;  %v208_v51 = vshll.u32 %v44_v12, 16  ;;  %v214_v53 = vshll.u32 %v2439_v29, 16 }
  0x20   :  { %v188_v54 = vrot.slane %v187_v41, 4  ;;  %v197_v55 = vor.u32 %v196_v42, %v192_v33  ;;  %v218_v56 = vshrl.u32 %v2439_v29, 16  ;;  %v224_v58 = vshll.u32 %v2450_v36, 16 }
  0x21   :  { %2070 = vmatprep.mubr.msk.bf16.mxu0 %vm278_vm3, %v1892_v50  ;;  %v210_v0 = vrot.slane %v208_v51, 5  ;;  %v216_v1 = vrot.slane %v214_v53, 5  ;;  %v1910_v2 = vcombine.low %v44_v12, %v2439_v29  ;;  %v229_v8 = vshrl.u32 %v46_v45, 16 }
  0x22   :  { %v193_v9 = vsel %vm2305_vm4, %v188_v54, %v192_v33  ;;  %v198_v10 = vrot.slane %v197_v55, 4  ;;  %v220_v11 = vrot.slane %v218_v56, 4  ;;  %v226_v14 = vrot.slane %v224_v58, 5  ;;  %v568_v58 = vld [vmem:[%s3047_s0] sm:$0xe] }
  0x23   :  { %v211_v15 = vor.u32 %v210_v0, %v207_v48  ;;  %2092 = vmatprep.mubr.msk.bf16.mxu1 %vm278_vm3, %v1910_v2  ;;  %v231_v17 = vrot.slane %v229_v8, 4  ;;  %v232_v22 = vshll.u32 %v46_v45, 16  ;;  %v238_v12 = vshll.u32 %v2466_v59, 16 }
  0x24   :  { %v203_v26 = vsel %vm2305_vm4, %v198_v10, %v202_v43  ;;  %v221_v28 = vor.u32 %v220_v11, %v216_v1  ;;  %v242_v32 = vshrl.u32 %v2466_v59, 16  ;;  %v248_v33 = vshll.u32 %v2475_v7, 16 }
  0x25   :  { %v1893_v35 = vcombine.low %v193_v9, %v203_v26  ;;  %v212_v38 = vrot.slane %v211_v15, 4  ;;  %v234_v39 = vrot.slane %v232_v22, 5  ;;  %v240_v41 = vrot.slane %v238_v12, 5 }
  0x26   :  { %v222_v42 = vrot.slane %v221_v28, 4  ;;  %v244_v50 = vrot.slane %v242_v32, 4  ;;  %v250_v48 = vrot.slane %v248_v33, 5  ;;  %v1911_v51 = vcombine.low %v46_v45, %v2466_v59  ;;  %v2524_v33 = vld [vmem:[%s3047_s0 + $0x8] sm:$0x3] }
  0x27   :  { %2071 = vmatmul.mubr.msk.bf16.gmra.mxu0 %vm278_vm3, %v1893_v35  ;;  %v217_v43 = vsel %vm2305_vm4, %v212_v38, %v216_v1  ;;  %v235_v54 = vor.u32 %v234_v39, %v231_v17  ;;  %v1063_v55 = vsel %vm303_vm0, %v2371_v25, 0  ;;  %vm592_vm5 = vcmask 1042432   ;;  %v569_v1 = vld [vmem:[%s3047_s0 + $0xc] sm:$0xe] }
  0x28   :  { %v227_v0 = vsel %vm2305_vm4, %v222_v42, %v226_v14  ;;  %v245_v2 = vor.u32 %v244_v50, %v240_v41  ;;  %2093 = vmatmul.mubr.msk.bf16.gmra.mxu1 %vm278_vm3, %v1911_v51  ;;  %vm593_vm6 = vcmask 1046532   ;;  %v1920_v45 = vrot.slane %v568_v58, 9 }
  0x29   :  { %v1894_v8 = vcombine.low %v217_v43, %v227_v0  ;;  %v236_v9 = vrot.slane %v235_v54, 4  ;;  %2115 = vmatpush3.bf16.msra.mxu1 %v1063_v55  ;;  %vm2506_vm7 = vmor %vm592_vm5, %vm593_vm6  ;;  %v597_v10 = vrot.slane %v2268_v5, 5  ;;  %v1921_v11 = vrot.slane %v569_v1, 9 }
  0x2a   :  { %v246_v14 = vrot.slane %v245_v2, 4  ;;  %v604_v15 = vrot.slane %v2290_v16, 5  ;;  %v2514_v17 = vsel %vm303_vm0, %v2389_v37, 0  ;;  %vm825_vm8 = vsmask.f32 2304 }
  0x2b   :  { %2074 = vmatprep.mubr.msk.bf16.mxu0 %vm278_vm3, %v1894_v8  ;;  %v241_v22 = vsel %vm2305_vm4, %v236_v9, %v240_v41  ;;  %v598_v26 = vsel %vm2506_vm7, %v1920_v45, %v597_v10  ;;  %v599_v28 = vrot.slane %v597_v10, 4  ;;  %vm826_vm9 = vsmask.f32 6416 }
  0x2c   :  { %v251_v37 = vsel %vm2305_vm4, %v246_v14, %v250_v48  ;;  %v605_v35 = vsel %vm2506_vm7, %v1921_v11, %v604_v15  ;;  %v606_v38 = vrot.slane %v604_v15, 4  ;;  %v829_v39 = vshrl.u32 %v568_v58, 16  ;;  %vm2556_vm10 = vmor %vm825_vm8, %vm826_vm9 }
  0x2d   :  { %v1895_v42 = vcombine.low %v241_v22, %v251_v37  ;;  %v601_v41 = vsel %vm2506_vm7, %v599_v28, %v600_v13  ;;  %v832_v50 = vshll.u32 %v568_v58, 16  ;;  %v839_v51 = vor.u32 %v2299_v24, %v2297_v23 }
  0x2e   :  { %v1929_v48 = vcombine.low %v598_v26, %v601_v41  ;;  %v608_v43 = vsel %vm2506_vm7, %v606_v38, %v607_v34  ;;  %v831_v54 = vrot.slane %v829_v39, 5  ;;  %v843_v6 = vshrl.u32 %v2524_v33, 16  ;;  %v570_v34 = vld [vmem:[%s3047_s0 + $0x18] sm:$0xe]  ;;  %v571_v38 = vld [vmem:[%s3047_s0 + $0x24] sm:$0xe] }
  0x2f   :  { %2075 = vmatmul.mubr.msk.bf16.gmra.mxu0 %vm278_vm3, %v1895_v42  ;;  %v1930_v13 = vcombine.low %v605_v35, %v608_v43  ;;  %v834_v55 = vrot.slane %v832_v50, 6  ;;  %v841_v58 = vrot.slane %v839_v51, 4  ;;  %v846_v23 = vshll.u32 %v2524_v33, 16 }
  0x30   :  { %2098 = vmatprep.mubr.msk.bf16.mxu0 %vm278_vm3, %v1929_v48  ;;  %v845_v24 = vrot.slane %v843_v6, 5  ;;  %v852_v0 = vshrl.u32 %v569_v1, 16  ;;  %v855_v2 = vshll.u32 %v569_v1, 16  ;;  %v866_v21 = vshrl.u32 %v2539_v30, 16 }
  0x31   :  { %v835_v45 = vor.u32 %v834_v55, %v831_v54  ;;  %v848_v8 = vrot.slane %v846_v23, 6  ;;  %v869_v9 = vshll.u32 %v2539_v30, 16  ;;  %v1922_v10 = vrot.slane %v570_v34, 9 }
  0x32   :  { %v854_v14 = vrot.slane %v852_v0, 5  ;;  %v857_v15 = vrot.slane %v855_v2, 6  ;;  %v868_v1 = vrot.slane %v866_v21, 5  ;;  %v611_v22 = vrot.slane %v2318_v44, 5  ;;  %v2578_v0 = vld [vmem:[%s3047_s0 + $0x20] sm:$0x3] }
  0x33   :  { %v836_v26 = vrot.slane %v835_v45, 4  ;;  %v849_v28 = vor.u32 %v848_v8, %v845_v24  ;;  %v871_v37 = vrot.slane %v869_v9, 6  ;;  %v614_v35 = vrot.slane %v2328_v49, 5 }
  0x34   :  { %v858_v39 = vor.u32 %v857_v15, %v854_v14  ;;  %v612_v42 = vsel %vm2506_vm7, %v1922_v10, %v611_v22  ;;  %v613_v41 = vrot.slane %v611_v22, 4  ;;  %v1923_v50 = vrot.slane %v571_v38, 9 }
  0x35   :  { %v840_v48 = vsel %vm2556_vm10, %v836_v26, %v839_v51  ;;  %v850_v43 = vsel %vm2556_vm10, %v841_v58, %v849_v28  ;;  %v872_v54 = vor.u32 %v871_v37, %v868_v1  ;;  %v618_v6 = vrot.slane %v2345_v63, 5 }
  0x36   :  { %v1946_v49 = vcombine.low %v840_v48, %v850_v43  ;;  %v859_v55 = vrot.slane %v858_v39, 4  ;;  %v615_v23 = vsel %vm2506_vm7, %v613_v41, %v614_v35  ;;  %v621_v24 = vrot.slane %v2354_v4, 5 }
  0x37   :  { %2099 = vmatmul.mubr.msk.bf16.vlgmr.msra.gmra.mxu0 %vm278_vm3, %v1930_v13  ;;  %v873_v51 = vsel %vm2556_vm10, %v864_v60, %v872_v54  ;;  %v1931_v58 = vcombine.low %v612_v42, %v615_v23  ;;  %v619_v2 = vsel %vm2506_vm7, %v1923_v50, %v618_v6  ;;  %v620_v21 = vrot.slane %v618_v6, 4 }
  0x38   :  { %2133 = vmatpush3.bf16.msra.mxu0 %v2514_v17  ;;  %2116 = vmatprep.mubr.msk.bf16.mxu1 %vm278_vm3, %v1946_v49  ;;  %v863_v4 = vsel %vm2556_vm10, %v859_v55, %v2330_v52  ;;  %v875_v45 = vshrl.u32 %v570_v34, 16  ;;  %v878_v13 = vshll.u32 %v570_v34, 16  ;;  %v883_v8 = vrot.slane %v122_v61, 5  ;;  %v2604_v61 = vld [vmem:[%s3047_s0 + $0x2c] sm:$0x3] }
  0x39   :  { %v1947_v9 = vcombine.low %v863_v4, %v873_v51  ;;  %2102 = vmatprep.mubr.msk.bf16.mxu0 %vm278_vm3, %v1931_v58  ;;  %v622_v60 = vsel %vm2506_vm7, %v620_v21, %v621_v24  ;;  %v884_v17 = vrot.slane %v118_v57, 6  ;;  %v889_v10 = vshrl.u32 %v2578_v0, 16 }
  0x3a   :  { %v1932_v14 = vcombine.low %v619_v2, %v622_v60  ;;  %v877_v15 = vrot.slane %v875_v45, 5  ;;  %v880_v1 = vrot.slane %v878_v13, 6  ;;  %v892_v52 = vshll.u32 %v2578_v0, 16 }
  0x3b   :  { %2117 = vmatmul.mubr.msk.bf16.vlgmr.msra.gmra.mxu1 %vm278_vm3, %v1947_v9  ;;  %v885_v34 = vor.u32 %v884_v17, %v883_v8  ;;  %v891_v22 = vrot.slane %v889_v10, 5  ;;  %v898_v26 = vshrl.u32 %v571_v38, 16  ;;  %v901_v28 = vshll.u32 %v571_v38, 16  ;;  %v572_v38 = vld [vmem:[%s3047_s0 + $0x30] sm:$0xe] }
  0x3c   :  { %v881_v37 = vor.u32 %v880_v1, %v877_v15  ;;  %v894_v57 = vrot.slane %v892_v52, 6  ;;  %v906_v35 = vrot.slane %v146_v20, 5  ;;  %v907_v39 = vrot.slane %v142_v19, 6  ;;  %v573_v8 = vld [vmem:[%s3047_s0 + $0x3c] sm:$0xe] }
  0x3d   :  { %v887_v42 = vrot.slane %v885_v34, 4  ;;  %v900_v41 = vrot.slane %v898_v26, 5  ;;  %v903_v50 = vrot.slane %v901_v28, 6  ;;  %v912_v48 = vshrl.u32 %v2604_v61, 16  ;;  %v2636_v1 = vld [vmem:[%s3047_s0 + $0x38] sm:$0x3] }
  0x3e   :  { %v882_v43 = vrot.slane %v881_v37, 4  ;;  %v895_v54 = vor.u32 %v894_v57, %v891_v22  ;;  %v908_v6 = vor.u32 %v907_v39, %v906_v35  ;;  %v915_v49 = vshll.u32 %v2604_v61, 16 }
  0x3f   :  { %2103 = vmatmul.mubr.msk.bf16.gmra.mxu0 %vm278_vm3, %v1932_v14  ;;  %v904_v20 = vor.u32 %v903_v50, %v900_v41  ;;  %v914_v55 = vrot.slane %v912_v48, 5  ;;  %v1924_v23 = vrot.slane %v572_v38, 9  ;;  %v625_v19 = vrot.slane %v2378_v31, 5 }
  0x40   :  { %v886_v24 = vsel %vm2556_vm10, %v882_v43, %v885_v34  ;;  %v896_v51 = vsel %vm2556_vm10, %v887_v42, %v895_v54  ;;  %v910_v58 = vrot.slane %v908_v6, 4  ;;  %v917_v2 = vrot.slane %v915_v49, 6 }
  0x41   :  { %v1948_v21 = vcombine.low %v886_v24, %v896_v51  ;;  %v905_v4 = vrot.slane %v904_v20, 4  ;;  %v626_v45 = vsel %vm2506_vm7, %v1924_v23, %v625_v19  ;;  %v627_v13 = vrot.slane %v625_v19, 4 }
  0x42   :  { %v918_v9 = vor.u32 %v917_v2, %v914_v55  ;;  %v628_v60 = vrot.slane %v2397_v40, 5  ;;  %v1925_v17 = vrot.slane %v573_v8, 9  ;;  %v632_v10 = vrot.slane %v2416_v62, 5 }
  0x43   :  { %2120 = vmatprep.mubr.msk.bf16.mxu1 %vm278_vm3, %v1948_v21  ;;  %v909_v14 = vsel %vm2556_vm10, %v905_v4, %v908_v6  ;;  %v635_v15 = vrot.slane %v2425_v3, 5  ;;  %v921_v52 = vshrl.u32 %v572_v38, 16  ;;  %v924_v34 = vshll.u32 %v572_v38, 16  ;;  %v2657_v6 = vld [vmem:[%s3047_s0 + $0x44] sm:$0x3] }
  0x44   :  { %v919_v40 = vsel %vm2556_vm10, %v910_v58, %v918_v9  ;;  %v629_v22 = vsel %vm2506_vm7, %v627_v13, %v628_v60  ;;  %v633_v26 = vsel %vm2506_vm7, %v1925_v17, %v632_v10  ;;  %v634_v28 = vrot.slane %v632_v10, 4  ;;  %v574_v4 = vld [vmem:[%s3047_s0 + $0x48] sm:$0xe]  ;;  %v575_v10 = vld [vmem:[%s3047_s0 + $0x54] sm:$0xe] }
  0x45   :  { %v1949_v37 = vcombine.low %v909_v14, %v919_v40  ;;  %v1933_v57 = vcombine.low %v626_v45, %v629_v22  ;;  %v923_v3 = vrot.slane %v921_v52, 5  ;;  %v926_v35 = vrot.slane %v924_v34, 6 }
  0x46   :  { %v636_v39 = vsel %vm2506_vm7, %v634_v28, %v635_v15  ;;  %v929_v42 = vrot.slane %v170_v47, 5  ;;  %v930_v41 = vrot.slane %v166_v46, 6  ;;  %v935_v50 = vshrl.u32 %v2636_v1, 16 }
  0x47   :  { %2121 = vmatmul.mubr.msk.bf16.gmra.mxu1 %vm278_vm3, %v1949_v37  ;;  %2106 = vmatprep.mubr.msk.bf16.mxu0 %vm278_vm3, %v1933_v57  ;;  %v1934_v48 = vcombine.low %v633_v26, %v636_v39  ;;  %v927_v43 = vor.u32 %v926_v35, %v923_v3  ;;  %v938_v54 = vshll.u32 %v2636_v1, 16  ;;  %v944_v49 = vshrl.u32 %v573_v8, 16 }
  0x48   :  { %v931_v47 = vor.u32 %v930_v41, %v929_v42  ;;  %v937_v38 = vrot.slane %v935_v50, 5  ;;  %v947_v20 = vshll.u32 %v573_v8, 16  ;;  %v952_v46 = vrot.slane %v194_v27, 5  ;;  %v2690_v42 = vld [vmem:[%s3047_s0 + $0x50] sm:$0x3] }
  0x49   :  { %2107 = vmatmul.mubr.msk.bf16.gmra.mxu0 %vm278_vm3, %v1934_v48  ;;  %v928_v55 = vrot.slane %v927_v43, 4  ;;  %v940_v23 = vrot.slane %v938_v54, 6  ;;  %v946_v19 = vrot.slane %v944_v49, 5  ;;  %v953_v24 = vrot.slane %v190_v18, 6 }
  0x4a   :  { %v933_v51 = vrot.slane %v931_v47, 4  ;;  %v949_v58 = vrot.slane %v947_v20, 6  ;;  %v958_v2 = vshrl.u32 %v2657_v6, 16  ;;  %v961_v21 = vshll.u32 %v2657_v6, 16 }
  0x4b   :  { %v932_v27 = vsel %vm2556_vm10, %v928_v55, %v931_v47  ;;  %v941_v45 = vor.u32 %v940_v23, %v937_v38  ;;  %v954_v13 = vor.u32 %v953_v24, %v952_v46  ;;  %v1926_v8 = vrot.slane %v574_v4, 9 }
  0x4c   :  { %v950_v9 = vor.u32 %v949_v58, %v946_v19  ;;  %v960_v60 = vrot.slane %v958_v2, 5  ;;  %v963_v17 = vrot.slane %v961_v21, 6  ;;  %v639_v18 = vrot.slane %v2439_v29, 5  ;;  %v2709_v58 = vld [vmem:[%s3047_s0 + $0x5c] sm:$0x3] }
  0x4d   :  { %v942_v14 = vsel %vm2556_vm10, %v933_v51, %v941_v45  ;;  %v956_v15 = vrot.slane %v954_v13, 4  ;;  %v642_v52 = vrot.slane %v2450_v36, 5  ;;  %v1927_v34 = vrot.slane %v575_v10, 9 }
  0x4e   :  { %v1950_v40 = vcombine.low %v932_v27, %v942_v14  ;;  %v951_v22 = vrot.slane %v950_v9, 4  ;;  %v964_v26 = vor.u32 %v963_v17, %v960_v60  ;;  %v640_v28 = vsel %vm2506_vm7, %v1926_v8, %v639_v18  ;;  %v1178_v9 = vld [vmem:[%s3047_s0] sm:$0xc] }
  0x4f   :  { %v641_v37 = vrot.slane %v639_v18, 4  ;;  %v646_v57 = vrot.slane %v2466_v59, 5  ;;  %v649_v3 = vrot.slane %v2475_v7, 5  ;;  %v967_v35 = vshrl.u32 %v574_v4, 16 }
  0x50   :  { %2124 = vmatprep.mubr.msk.bf16.mxu1 %vm278_vm3, %v1950_v40  ;;  %v955_v39 = vsel %vm2556_vm10, %v951_v22, %v954_v13  ;;  %v965_v36 = vsel %vm2556_vm10, %v956_v15, %v964_v26  ;;  %v970_v41 = vshll.u32 %v574_v4, 16  ;;  %v975_v50 = vrot.slane %v218_v56, 5  ;;  %v1436_v40 = vld [vmem:[%s3048_s1 + $0x48] sm:$0xff] }
  0x51   :  { %v1951_v48 = vcombine.low %v955_v39, %v965_v36  ;;  %v643_v7 = vsel %vm2506_vm7, %v641_v37, %v642_v52  ;;  %v647_v43 = vsel %vm2506_vm7, %v1927_v34, %v646_v57  ;;  %v648_v54 = vrot.slane %v646_v57, 4 }
  0x52   :  { %v1935_v49 = vcombine.low %v640_v28, %v643_v7  ;;  %v969_v47 = vrot.slane %v967_v35, 5  ;;  %v972_v38 = vrot.slane %v970_v41, 6  ;;  %v976_v20 = vrot.slane %v214_v53, 6 }
  0x53   :  { %2125 = vmatmul.mubr.msk.bf16.gmra.mxu1 %vm278_vm3, %v1951_v48  ;;  %v650_v46 = vsel %vm2506_vm7, %v648_v54, %v649_v3  ;;  %v981_v56 = vshrl.u32 %v2690_v42, 16  ;;  %v984_v55 = vshll.u32 %v2690_v42, 16  ;;  %v990_v23 = vshrl.u32 %v575_v10, 16  ;;  %v1180_v3 = vld [vmem:[%s3047_s0 + $0x18] sm:$0xc] }
  0x54   :  { %2110 = vmatprep.mubr.msk.bf16.mxu0 %vm278_vm3, %v1935_v49  ;;  %v1936_v19 = vcombine.low %v647_v43, %v650_v46  ;;  %v973_v24 = vor.u32 %v972_v38, %v969_v47  ;;  %v977_v51 = vor.u32 %v976_v20, %v975_v50  ;;  %v993_v53 = vshll.u32 %v575_v10, 16  ;;  %v1181_v43 = vld [vmem:[%s3047_s0 + $0x24] sm:$0xc]  ;;  %v1182_v46 = vld [vmem:[%s3047_s0 + $0x30] sm:$0xc] }
  0x55   :  { %v983_v2 = vrot.slane %v981_v56, 5  ;;  %v986_v21 = vrot.slane %v984_v55, 6  ;;  %v992_v25 = vrot.slane %v990_v23, 5  ;;  %v998_v4 = vrot.slane %v242_v32, 5 }
  0x56   :  { %2111 = vmatmul.mubr.msk.bf16.gmra.mxu0 %vm278_vm3, %v1936_v19  ;;  %v974_v27 = vrot.slane %v973_v24, 4  ;;  %v979_v45 = vrot.slane %v977_v51, 4  ;;  %v995_v13 = vrot.slane %v993_v53, 6  ;;  %v999_v8 = vrot.slane %v238_v12, 6  ;;  %v1179_v12 = vld [vmem:[%s3047_s0 + $0xc] sm:$0xc] }
  0x57   :  { %v987_v60 = vor.u32 %v986_v21, %v983_v2  ;;  %v1004_v17 = vshrl.u32 %v2709_v58, 16  ;;  %v1007_v18 = vshll.u32 %v2709_v58, 16  ;;  %vm1202_vm11 = vcmask 1041408  }
  0x58   :  { %v978_v32 = vsel %vm2556_vm10, %v974_v27, %v977_v51  ;;  %v996_v10 = vor.u32 %v995_v13, %v992_v25  ;;  %v1000_v14 = vor.u32 %v999_v8, %v998_v4  ;;  %vm1203_vm12 = vcmask 1045508   ;;  %v1183_v13 = vld [vmem:[%s3047_s0 + $0x3c] sm:$0xc] }
  0x59   :  { %v988_v15 = vsel %vm2556_vm10, %v979_v45, %v987_v60  ;;  %v1006_v52 = vrot.slane %v1004_v17, 5  ;;  %v1009_v34 = vrot.slane %v1007_v18, 6  ;;  %vm2728_vm13 = vmor %vm1202_vm11, %vm1203_vm12  ;;  %v1962_v22 = vrot.slane %v1178_v9, 10 }
  0x5a   :  { %v1952_v26 = vcombine.low %v978_v32, %v988_v15  ;;  %v997_v28 = vrot.slane %v996_v10, 4  ;;  %v1002_v37 = vrot.slane %v1000_v14, 4  ;;  %v1207_v57 = vrot.slane %v2268_v5, 6  ;;  %v1427_v10 = vld [vmem:[%s3048_s1] sm:$0xff] }
  0x5b   :  { %v1010_v35 = vor.u32 %v1009_v34, %v1006_v52  ;;  %v1210_v39 = vrot.slane %v2524_v33, 6  ;;  %v1963_v36 = vrot.slane %v1179_v12, 10  ;;  %v1214_v41 = vrot.slane %v2290_v16, 6  ;;  %v1429_v52 = vld [vmem:[%s3048_s1 + $0x10] sm:$0xff] }
  0x5c   :  { %2128 = vmatprep.mubr.msk.bf16.mxu1 %vm278_vm3, %v1952_v26  ;;  %v1001_v50 = vsel %vm2556_vm10, %v997_v28, %v1000_v14  ;;  %v1208_v48 = vsel %vm2728_vm13, %v1962_v22, %v1207_v57  ;;  %v1209_v7 = vrot.slane %v1207_v57, 4  ;;  %v1217_v5 = vrot.slane %v2539_v30, 6  ;;  %v1428_v22 = vld [vmem:[%s3048_s1 + $0x8] sm:$0xff]  ;;  %v1430_v57 = vld [vmem:[%s3048_s1 + $0x18] sm:$0xff] }
  0x5d   :  { %v1011_v33 = vsel %vm2556_vm10, %v1002_v37, %v1010_v35  ;;  %v1215_v16 = vsel %vm2728_vm13, %v1963_v36, %v1214_v41  ;;  %v1216_v54 = vrot.slane %v1214_v41, 4  ;;  %v1964_v49 = vrot.slane %v1180_v3, 10  ;;  %v1185_v37 = vld [vmem:[%s3047_s0 + $0x54] sm:$0xc]  ;;  %v1431_v41 = vld [vmem:[%s3048_s1 + $0x20] sm:$0xff] }
  0x5e   :  { %v1953_v47 = vcombine.low %v1001_v50, %v1011_v33  ;;  %v1211_v38 = vsel %vm2728_vm13, %v1209_v7, %v1210_v39  ;;  %v1221_v20 = vrot.slane %v2318_v44, 6  ;;  %v1224_v30 = vrot.slane %v2578_v0, 6  ;;  %v1432_v50 = vld [vmem:[%s3048_s1 + $0x28] sm:$0xff]  ;;  %v1433_v7 = vld [vmem:[%s3048_s1 + $0x30] sm:$0xff]  ;;  %v1435_v33 = vld [vmem:[%s3048_s1 + $0x40] sm:$0xff] }
  0x5f   :  { %v1971_v56 = vcombine.low %v1208_v48, %v1211_v38  ;;  %v1218_v11 = vsel %vm2728_vm13, %v1216_v54, %v1217_v5  ;;  %v1965_v55 = vrot.slane %v1181_v43, 10  ;;  %v1228_v23 = vrot.slane %v2345_v63, 6  ;;  %v1434_v5 = vld [vmem:[%s3048_s1 + $0x38] sm:$0xff]  ;;  %v1441_v38 = vld [vmem:[%s3048_s1 + $0x70] sm:$0xff] }
  0x60   :  { %2129 = vmatmul.mubr.msk.bf16.gmra.mxu1 %vm278_vm3, %v1953_v47  ;;  %v1972_v19 = vcombine.low %v1215_v16, %v1218_v11  ;;  %v1222_v24 = vsel %vm2728_vm13, %v1964_v49, %v1221_v20  ;;  %v1223_v44 = vrot.slane %v1221_v20, 4  ;;  %v1231_v0 = vrot.slane %v2604_v61, 6  ;;  %v1437_v16 = vld [vmem:[%s3048_s1 + $0x50] sm:$0xff]  ;;  %v1438_v54 = vld [vmem:[%s3048_s1 + $0x58] sm:$0xff]  ;;  %v1439_v49 = vld [vmem:[%s3048_s1 + $0x60] sm:$0xff] }
  0x61   :  { %2134 = vmatprep.mubr.msk.bf16.mxu0 %vm278_vm3, %v1971_v56  ;;  %v1230_v51 = vrot.slane %v1228_v23, 4  ;;  %v1966_v53 = vrot.slane %v1182_v46, 10  ;;  %v1235_v2 = vrot.slane %v2378_v31, 6  ;;  %v1229_v21 = vsel %vm2728_vm13, %v1965_v55, %v1228_v23  ;;  %v1440_v47 = vld [vmem:[%s3048_s1 + $0x68] sm:$0xff]  ;;  %v1442_v20 = vld [vmem:[%s3048_s1 + $0x78] sm:$0xff]  ;;  %v2199_v46 = vld [vmem:[%s3049_s4 + $0x30] sm:$0xff]  }
  0x62   :  { %2135 = vmatmul.mubr.msk.bf16.vlgmr.msra.gmra.mxu0 %vm278_vm3, %v1972_v19  ;;  %v1225_v63 = vsel %vm2728_vm13, %v1223_v44, %v1224_v30  ;;  %v1238_v25 = vrot.slane %v2636_v1, 6  ;;  %v1242_v45 = vrot.slane %v2416_v62, 6  ;;  %v1184_v1 = vld [vmem:[%s3047_s0 + $0x48] sm:$0xc]  ;;  %v1249_v9 = vrot.slane %v2439_v29, 6  ;;  %v2198_v30 = vld [vmem:[%s3049_s4 + $0x38] sm:$0xff]  }
  0x63   :  { %v1973_v4 = vcombine.low %v1222_v24, %v1225_v63  ;;  %v1232_v61 = vsel %vm2728_vm13, %v1230_v51, %v1231_v0  ;;  %v1237_v27 = vrot.slane %v1235_v2, 4  ;;  %v1236_v31 = vsel %vm2728_vm13, %v1966_v53, %v1235_v2  ;;  %2150 = vmatprep.subr.bf16.mxu1 %v2198_v30  ;;  %v2200_v56 = vld [vmem:[%s3049_s4 + $0x28] sm:$0xff]   ;;  %v2201_v11 = vld [vmem:[%s3049_s4 + $0x20] sm:$0xff]   ;;  %v2202_v55 = vld [vmem:[%s3049_s4 + $0x18] sm:$0xff]  }
  0x64   :  { %v1974_v60 = vcombine.low %v1229_v21, %v1232_v61  ;;  %v1967_v17 = vrot.slane %v1183_v13, 10  ;;  %v1244_v18 = vrot.slane %v1242_v45, 4  ;;  %v1245_v32 = vrot.slane %v2657_v6, 6  ;;  %2151 = vmatpush3.bf16.msra.mxu1 %v2198_v30  ;;  %v2203_v23 = vld [vmem:[%s3049_s4 + $0x10] sm:$0xff]   ;;  %v2204_v19 = vld [vmem:[%s3049_s4 + $0x8] sm:$0xff]   ;;  %v2205_v24 = vld [vmem:[%s3049_s4] sm:$0xff]  }
  0x65   :  { %2138 = vmatprep.mubr.msk.bf16.mxu0 %vm278_vm3, %v1973_v4  ;;  %v1239_v8 = vsel %vm2728_vm13, %v1237_v27, %v1238_v25  ;;  %v1968_v14 = vrot.slane %v1184_v1, 10  ;;  %v1251_v12 = vrot.slane %v1249_v9, 4  ;;  %v1252_v15 = vrot.slane %v2690_v42, 6  ;;  %2152 = vmatprep.subr.bf16.mxu1 %v2199_v46 }
  0x66   :  { %v1975_v62 = vcombine.low %v1236_v31, %v1239_v8  ;;  %v2206_v34 = vmov 0   ;;  %v1243_v29 = vsel %vm2728_vm13, %v1967_v17, %v1242_v45  ;;  %v1246_v6 = vsel %vm2728_vm13, %v1244_v18, %v1245_v32 }
  0x67   :  { %2188 = vset.pattern.permute.xlu0 %v2206_v34  ;;  %2189 = vset.pattern.permute.xlu1 %v2206_v34  ;;  %v1256_v42 = vrot.slane %v2466_v59, 6  ;;  %v1250_v26 = vsel %vm2728_vm13, %v1968_v14, %v1249_v9  ;;  %v1253_v28 = vsel %vm2728_vm13, %v1251_v12, %v1252_v15  ;;  %v1976_v59 = vcombine.low %v1243_v29, %v1246_v6 }
  0x68   :  { %1484 = vperm.xlu0 %2188, %v1427_v10   ;;  %1494 = vperm.xlu1 %2189, %v1429_v52   ;;  %v1977_v3 = vcombine.low %v1250_v26, %v1253_v28  ;;  %v1969_v35 = vrot.slane %v1185_v37, 10  ;;  %v1259_v36 = vrot.slane %v2709_v58, 6  ;;  %vm1850_vm14 = vcmask 1041409  }
  0x69   :  { %v1258_v39 = vrot.slane %v1256_v42, 4  ;;  %2153 = vmatpush3.bf16.msra.mxu1 %v2199_v46  ;;  %vm1853_vm15 = vcmask 1042434   ;;  %vm1856_vm0 = vcmask 1043459   ;;  %vm1859_vm1 = vcmask 1044484  }
  0x6a   :  { %2139 = vmatmul.mubr.msk.bf16.gmra.mxu0 %vm278_vm3, %v1974_v60  ;;  %v1257_v48 = vsel %vm2728_vm13, %v1969_v35, %v1256_v42  ;;  %2154 = vmatprep.subr.bf16.mxu1 %v2200_v56  ;;  %vm1862_vm2 = vcmask 1045509   ;;  %vm1868_vm4 = vcmask 1047559   ;;  %vm1881_vm5 = vcmask 7168  }
  0x6b   :  { %2142 = vmatprep.mubr.msk.bf16.mxu0 %vm278_vm3, %v1975_v62  ;;  %v1260_v58 = vsel %vm2728_vm13, %v1258_v39, %v1259_v36 }
  0x6c   :  { %1489 = vperm.xlu0 %2188, %v1428_v22   ;;  %1499 = vperm.xlu1 %2189, %v1430_v57   ;;  %v1978_v43 = vcombine.low %v1257_v48, %v1260_v58 }
  0x6d   :  { %2155 = vmatpush3.bf16.msra.mxu1 %v2200_v56 }
  0x6e   :  { %2156 = vmatprep.subr.bf16.mxu1 %v2201_v11 }
  0x70   :  { %1504 = vperm.xlu0 %2188, %v1431_v41   ;;  %1509 = vperm.xlu1 %2189, %v1432_v50  }
  0x71   :  { %2157 = vmatpush3.bf16.msra.mxu1 %v2201_v11 }
  0x72   :  { %2143 = vmatmul.mubr.msk.bf16.gmra.mxu0 %vm278_vm3, %v1976_v59  ;;  %2158 = vmatprep.subr.bf16.mxu1 %v2202_v55 }
  0x73   :  { %2146 = vmatprep.mubr.msk.bf16.mxu0 %vm278_vm3, %v1977_v3 }
  0x74   :  { %1514 = vperm.xlu0 %2188, %v1433_v7   ;;  %1519 = vperm.xlu1 %2189, %v1434_v5  }
  0x75   :  { %2159 = vmatpush3.bf16.msra.mxu1 %v2202_v55 }
  0x76   :  { %2160 = vmatprep.subr.bf16.mxu1 %v2203_v23 }
  0x78   :  { %1524 = vperm.xlu0 %2188, %v1435_v33   ;;  %1529 = vperm.xlu1 %2189, %v1436_v40  }
  0x79   :  { %2161 = vmatpush3.bf16.msra.mxu1 %v2203_v23 }
  0x7a   :  { %2147 = vmatmul.mubr.msk.bf16.gmra.mxu0 %vm278_vm3, %v1978_v43  ;;  %2162 = vmatprep.subr.bf16.mxu1 %v2204_v19  ;;  %vm1865_vm3 = vcmask 1046534  }
  0x7c   :  { %1534 = vperm.xlu0 %2188, %v1437_v16   ;;  %1539 = vperm.xlu1 %2189, %v1438_v54  }
  0x7d   :  { %2163 = vmatpush3.bf16.msra.mxu1 %v2204_v19 }
  0x7e   :  { %2164 = vmatprep.subr.bf16.mxu1 %v2205_v24 }
  0x80   :  { %1544 = vperm.xlu0 %2188, %v1439_v49   ;;  %1549 = vperm.xlu1 %2189, %v1440_v47  }
  0x81   :  { %2165 = vmatpush3.bf16.msra.mxu1 %v2205_v24 }
  0x84   :  { %1554 = vperm.xlu0 %2188, %v1441_v38   ;;  %1559 = vperm.xlu1 %2189, %v1442_v20  }
  0xcd   :  { %v2082_v44 = vpop.f32.mrf.mxu1 }
  0xcf   :  { %v505_v0 = vpop.f32.mrf.mxu1 }
  0xd1   :  { %v2083_v51 = vpop.f32.mrf.mxu1 }
  0xd3   :  { %v2064_v53 = vpop.f32.mrf.mxu0  ;;  %v508_v2 = vpop.f32.mrf.mxu1 }
  0xd4   :  { %v514_v20 = vadd.f32 %v2082_v44, %v2064_v53 }
  0xd5   :  { %v341_v63 = vpop.f32.mrf.mxu0  ;;  %v2884_v21 = vpop.f32.mrf.mxu1 }
  0xd6   :  { %v506_v46 = vadd.f32 %v505_v0, %v341_v63 }
  0xd7   :  { %v2065_v25 = vpop.f32.mrf.mxu0  ;;  %v2886_v4 = vpop.f32.mrf.mxu1 }
  0xd8   :  { %v517_v23 = vadd.f32 %v2083_v51, %v2065_v25 }
  0xd9   :  { %v344_v61 = vpop.f32.mrf.mxu0  ;;  %v2888_v27 = vpop.f32.mrf.mxu1 }
  0xdb   :  { %v2890_v31 = vpop.f32.mrf.mxu1 }
  0xdd   :  { %v2068_v45 = vpop.f32.mrf.mxu0 }
  0xde   :  { %v530_v44 = vadd.f32 %v2884_v21, %v2068_v45 }
  0xdf   :  { %v2892_v13 = vpop.f32.mrf.mxu0  ;;  %v2896_v1 = vpop.f32.mrf.mxu1 }
  0xe0   :  { %v522_v51 = vadd.f32 %v2886_v4, %v2892_v13 }
  0xe1   :  { %v2894_v8 = vpop.f32.mrf.mxu0  ;;  %v2900_v60 = vpop.f32.mrf.mxu1 }
  0xe3   :  { %v2898_v9 = vpop.f32.mrf.mxu0  ;;  %v2906_v18 = vpop.f32.mrf.mxu1 }
  0xe4   :  { %v2946_v30 = vpop.permute.xlu1 %1494  ;;  %v1485_v11 = vpop.permute.xlu0 %1484  ;;  %v525_v4 = vadd.f32 %v2890_v31, %v2898_v9 }
  0xe5   :  { %v2912_v14 = vpop.f32.mrf.mxu1 }
  0xe7   :  { %v2902_v62 = vpop.f32.mrf.mxu0 }
  0xe8   :  { %v2916_v15 = vpop.f32.mrf.mxu1  ;;  %v1490_v0 = vpop.permute.xlu0 %1489  ;;  %v546_v9 = vadd.f32 %v2896_v1, %v2902_v62 }
  0xe9   :  { %v2904_v17 = vpop.f32.mrf.mxu0 }
  0xea   :  { %v2922_v29 = vpop.f32.mrf.mxu1 }
  0xeb   :  { %v2908_v32 = vpop.f32.mrf.mxu0  ;;  %3064 = vst [vmem:[#allocation4_spill] sm:$0xff] %v2922_v29 }
  0xec   :  { %v2926_v22 = vpop.f32.mrf.mxu1 }
  0xed   :  { %v2910_v10 = vpop.f32.mrf.mxu0  ;;  %3066 = vst [vmem:[#allocation6_spill] sm:$0xff] %v2926_v22 }
  0xee   :  { %v2928_v37 = vpop.f32.mrf.mxu1 }
  0xef   :  { %v2914_v12 = vpop.f32.mrf.mxu0  ;;  %3067 = vst [vmem:[#allocation7_spill] sm:$0xff] %v2928_v37  ;;  %v509_v37 = vadd.f32 %v508_v2, %v344_v61  ;;  %v2960_v2 = vld [vmem:[%s3050_s3] ss:$0 sm:$0xff] }
  0xf1   :  { %v2918_v52 = vpop.f32.mrf.mxu0 }
  0xf3   :  { %v2920_v34 = vpop.f32.mrf.mxu0 }
  0xf4   :  { %3063 = vst [vmem:[#allocation3_spill] sm:$0xff] %v2920_v34 }
  0xf5   :  { %v2924_v6 = vpop.f32.mrf.mxu0 }
  0xf6   :  { %3065 = vst [vmem:[#allocation5_spill] sm:$0xff] %v2924_v6 }
  0xf7   :  { %v2100_v42 = vpop.f32.mrf.mxu0 }
  0xf8   :  { %v803_v56 = vadd.f32 %v2100_v42, %v514_v20 }
  0xf9   :  { %v738_v26 = vpop.f32.mrf.mxu0 }
  0xfa   :  { %v801_v19 = vadd.f32 %v738_v26, %v506_v46 }
  0xfb   :  { %v2101_v28 = vpop.f32.mrf.mxu0  ;;  %v2118_v59 = vpop.f32.mrf.mxu1 }
  0xfc   :  { %v804_v6 = vadd.f32 %v2101_v28, %v517_v23  ;;  %v538_v23 = vadd.f32 %v2900_v60, %v2904_v17 }
  0xfd   :  { %v741_v57 = vpop.f32.mrf.mxu0  ;;  %v1099_v39 = vpop.f32.mrf.mxu1 }
  0xfe   :  { %v802_v34 = vadd.f32 %v741_v57, %v509_v37 }
  0xff   :  { %v2104_v3 = vpop.f32.mrf.mxu0  ;;  %v2119_v50 = vpop.f32.mrf.mxu1 }
 0x100   :  { %v1165_v25 = vadd.f32 %v2119_v50, %v804_v6  ;;  %v807_v42 = vadd.f32 %v2104_v3, %v530_v44 }
 0x101   :  { %v754_v35 = vpop.f32.mrf.mxu0  ;;  %v1102_v58 = vpop.f32.mrf.mxu1 }
 0x102   :  { %v1163_v28 = vadd.f32 %v1102_v58, %v802_v34  ;;  %v805_v37 = vadd.f32 %v754_v35, %v522_v51  ;;  %v2971_v58 = vpop.permute.xlu0 %1504 }
 0x103   :  { %v2105_v36 = vpop.f32.mrf.mxu0 }
 0x105   :  { %v757_v41 = vpop.f32.mrf.mxu0 }
 0x106   :  { %v806_v50 = vadd.f32 %v757_v41, %v525_v4  ;;  %v1515_v17 = vpop.permute.xlu0 %1514 }
 0x107   :  { %v2122_v43 = vpop.f32.mrf.mxu1 }
 0x108   :  { %v1168_v34 = vadd.f32 %v2122_v43, %v807_v42 }
 0x109   :  { %v2930_v48 = vpop.f32.mrf.mxu0  ;;  %v1115_v40 = vpop.f32.mrf.mxu1 }
 0x10a   :  { %v811_v44 = vadd.f32 %v2930_v48, %v546_v9  ;;  %v541_v48 = vadd.f32 %v2912_v14, %v2910_v10  ;;  %v3071_v14 = vld [vmem:[#allocation4_spill] sm:$0xff] }
 0x10b   :  { %v2932_v7 = vpop.f32.mrf.mxu0  ;;  %v2123_v54 = vpop.f32.mrf.mxu1 }
 0x10c   :  { %v809_v1 = vadd.f32 %v2932_v7, %v538_v23  ;;  %v562_v7 = vadd.f32 %v2916_v15, %v2914_v12  ;;  %v3076_v23 = vld [vmem:[#allocation5_spill] sm:$0xff] }
 0x10d   :  { %v2934_v5 = vpop.f32.mrf.mxu0  ;;  %v2944_v38 = vpop.f32.mrf.mxu1 }
 0x10f   :  { %v2936_v33 = vpop.f32.mrf.mxu0 }
 0x113   :  { %v2950_v24 = vpop.f32.mrf.mxu1 }
 0x115   :  { %v2952_v29 = vpop.f32.mrf.mxu1 }
 0x116   :  { %v2938_v16 = vpop.f32.mrf.mxu0 }
 0x117   :  { %3068 = vst [vmem:[#allocation8_spill] sm:$0xff] %v2938_v16  ;;  %v1164_v16 = vadd.f32 %v2118_v59, %v803_v56  ;;  %v2127_v57 = vpop.f32.mrf.mxu1 }
 0x118   :  { %v2940_v49 = vpop.f32.mrf.mxu0 }
 0x119   :  { %3069 = vst [vmem:[#allocation9_spill] sm:$0xff] %v2940_v49  ;;  %v1500_v49 = vpop.permute.xlu1 %1499  ;;  %v1134_v20 = vpop.f32.mrf.mxu1 }
 0x11a   :  { %v2942_v47 = vpop.f32.mrf.mxu0 }
 0x11b   :  { %3070 = vst [vmem:[#allocation10_spill] sm:$0xff] %v2942_v47  ;;  %v1162_v47 = vadd.f32 %v1099_v39, %v801_v19  ;;  %v549_v19 = vadd.f32 %v2906_v18, %v2908_v32 }
 0x11c   :  { %v2948_v55 = vpop.f32.mrf.mxu0 }
 0x11d   :  { %v2967_v13 = vpop.permute.xlu1 %1509  ;;  %v812_v60 = vadd.f32 %v2934_v5, %v549_v19 }
 0x11f   :  { %v1173_v4 = vadd.f32 %v2127_v57, %v812_v60 }
 0x120   :  { %v2130_v62 = vpop.f32.mrf.mxu1 }
 0x122   :  { %v2136_v22 = vpop.f32.mrf.mxu0 }
 0x123   :  { %v1413_v53 = vadd.f32 %v2136_v22, %v1164_v16  ;;  %v533_v22 = vadd.f32 %v2888_v27, %v2894_v8 }
 0x124   :  { %v1348_v63 = vpop.f32.mrf.mxu0 }
 0x125   :  { %v1411_v61 = vadd.f32 %v1348_v63, %v1162_v47  ;;  %v1452_v6 = vadd.f32 %v2960_v2, %v1413_v53  ;;  %v808_v35 = vadd.f32 %v2105_v36, %v533_v22  ;;  %v1166_v47 = vadd.f32 %v1115_v40, %v805_v37  ;;  %v1520_v53 = vpop.permute.xlu1 %1519 }
 0x126   :  { %v2137_v26 = vpop.f32.mrf.mxu0  ;;  %v1170_v37 = vadd.f32 %v2952_v29, %v809_v1  ;;  %v554_v22 = vadd.f32 %v3071_v14, %v2918_v52  ;;  %v3072_v29 = vld [vmem:[#allocation3_spill] sm:$0xff] }
 0x127   :  { %v1450_v21 = vadd.f32 %v2960_v2, %v1411_v61  ;;  %v1414_v45 = vadd.f32 %v2137_v26, %v1165_v25  ;;  %v1468_v46 = vmax.f32 %v1452_v6, 0.0  ;;  %v1169_v40 = vadd.f32 %v2123_v54, %v808_v35  ;;  %v3073_v35 = vld [vmem:[#allocation6_spill] sm:$0xff] }
 0x128   :  { %v1351_v59 = vpop.f32.mrf.mxu0  ;;  %v1167_v25 = vadd.f32 %v2944_v38, %v806_v50  ;;  %v3074_v50 = vld [vmem:[#allocation8_spill] sm:$0xff] }
 0x129   :  { %v1453_v3 = vadd.f32 %v2960_v2, %v1414_v45  ;;  %v1412_v39 = vadd.f32 %v1351_v59, %v1163_v28  ;;  %v1466_v27 = vmax.f32 %v1450_v21, 0.0  ;;  %v1564_v26 = vmul.f32 %v2946_v30, %v1468_v46  ;;  %v1147_v45 = vpop.f32.mrf.mxu1  ;;  %v1530_v6 = vpop.permute.xlu1 %1529 }
 0x12a   :  { %v2140_v16 = vpop.f32.mrf.mxu0  ;;  %v1172_v30 = vadd.f32 %v2950_v24, %v811_v44  ;;  %v810_v21 = vadd.f32 %v2936_v33, %v541_v48  ;;  %v565_v33 = vadd.f32 %v3073_v35, %v3072_v29 }
 0x12b   :  { %v1469_v8 = vmax.f32 %v1453_v3, 0.0  ;;  %v1451_v31 = vadd.f32 %v2960_v2, %v1412_v39  ;;  %v1417_v36 = vadd.f32 %v2140_v16, %v1168_v34  ;;  %v1562_v61 = vmul.f32 %v1485_v11, %v1466_v27  ;;  %v2131_v57 = vpop.f32.mrf.mxu1 }
 0x12c   :  { %v1364_v56 = vpop.f32.mrf.mxu0  ;;  %v815_v16 = vadd.f32 %v3074_v50, %v562_v7  ;;  %v1171_v52 = vadd.f32 %v1134_v20, %v810_v21 }
 0x12d   :  { %v1467_v43 = vmax.f32 %v1451_v31, 0.0  ;;  %v1415_v41 = vadd.f32 %v1364_v56, %v1166_v47  ;;  %v1565_v63 = vmul.f32 %v1500_v49, %v1469_v8  ;;  %v1456_v49 = vadd.f32 %v2960_v2, %v1417_v36  ;;  %v3075_v47 = vld [vmem:[#allocation9_spill] sm:$0xff]  ;;  %v1525_v8 = vpop.permute.xlu0 %1524 }
 0x12e   :  { %v2141_v51 = vpop.f32.mrf.mxu0  ;;  %v813_v27 = vadd.f32 %v3075_v47, %v554_v22 }
 0x12f   :  { %v1563_v42 = vmul.f32 %v1490_v0, %v1467_v43  ;;  %v1454_v18 = vadd.f32 %v2960_v2, %v1415_v41  ;;  %v1418_v32 = vadd.f32 %v2141_v51, %v1169_v40  ;;  %v1579_v11 = vpack.c.bf16 %v1565_v63, %v1564_v26  ;;  %v3077_v43 = vld [vmem:[#allocation7_spill] sm:$0xff]  ;;  %v3078_v41 = vld [vmem:[#allocation10_spill] sm:$0xff] }
 0x130   :  { %v1367_v54 = vpop.f32.mrf.mxu0  ;;  %v1472_v3 = vmax.f32 %v1456_v49, 0.0  ;;  %v557_v36 = vadd.f32 %v3077_v43, %v3076_v23  ;;  %v816_v19 = vadd.f32 %v3078_v41, %v565_v33  ;;  %v1174_v26 = vadd.f32 %v1147_v45, %v813_v27 }
 0x131   :  { %v1416_v38 = vadd.f32 %v1367_v54, %v1167_v25  ;;  %v1578_v28 = vpack.c.bf16 %v1563_v42, %v1562_v61  ;;  %v1457_v5 = vadd.f32 %v2960_v2, %v1418_v32  ;;  %v1470_v12 = vmax.f32 %v1454_v18, 0.0  ;;  %v1540_v61 = vpop.permute.xlu1 %1539  ;;  %v1150_v18 = vpop.f32.mrf.mxu1 }
 0x132   :  { %v2144_v0 = vpop.f32.mrf.mxu0  ;;  %v1568_v51 = vmul.f32 %v1515_v17, %v1472_v3  ;;  %v1177_v48 = vadd.f32 %v2131_v57, %v816_v19  ;;  %v1535_v49 = vpop.permute.xlu0 %1534  ;;  %v13_v57 = vstv %s3051_s7 }
 0x133   :  { %v1455_v10 = vadd.f32 %v2960_v2, %v1416_v38  ;;  %2166 = vmatprep.mubr.bf16.mxu1 %v1578_v28  ;;  %v1473_v15 = vmax.f32 %v1457_v5, 0.0  ;;  %v1421_v24 = vadd.f32 %v2144_v0, %v1172_v30  ;;  %v1566_v40 = vmul.f32 %v2971_v58, %v1470_v12  ;;  %14 = vst [vmem:[#allocation2] sm:$0x1] %v13_v57 }
 0x134   :  { %v1380_v59 = vpop.f32.mrf.mxu0  ;;  %2167 = vmatmul.mubr.bf16.vlgmr.msra.gmra.mxu1 %v1579_v11 }
 0x135   :  { %v1471_v39 = vmax.f32 %v1455_v10, 0.0  ;;  %v1419_v34 = vadd.f32 %v1380_v59, %v1170_v37  ;;  %v1569_v9 = vmul.f32 %v1520_v53, %v1473_v15  ;;  %v1460_v25 = vadd.f32 %v2960_v2, %v1421_v24  ;;  %v1550_v45 = vpop.permute.xlu1 %1549 }
 0x136   :  { %v2145_v31 = vpop.f32.mrf.mxu0  ;;  %v1176_v53 = vadd.f32 %v2130_v62, %v815_v16  ;;  %v1545_v59 = vpop.permute.xlu0 %1544 }
 0x137   :  { %v1567_v46 = vmul.f32 %v2967_v13, %v1471_v39  ;;  %v1422_v56 = vadd.f32 %v2145_v31, %v1173_v4  ;;  %v1458_v44 = vadd.f32 %v2960_v2, %v1419_v34  ;;  %v814_v13 = vadd.f32 %v2948_v55, %v557_v36 }
 0x138   :  { %v1383_v63 = vpop.f32.mrf.mxu0  ;;  %v1581_v54 = vpack.c.bf16 %v1569_v9, %v1568_v51  ;;  %v1476_v28 = vmax.f32 %v1460_v25, 0.0  ;;  %v3022_v9 = vld [vmem:[%s3052_s5] ss:$0 sm:$0xff] }
 0x139   :  { %v1461_v20 = vadd.f32 %v2960_v2, %v1422_v56  ;;  %v1420_v1 = vadd.f32 %v1383_v63, %v1171_v52  ;;  %v1580_v60 = vpack.c.bf16 %v1567_v46, %v1566_v40  ;;  %v1474_v17 = vmax.f32 %v1458_v44, 0.0  ;;  %v1560_v33 = vpop.permute.xlu1 %1559 }
 0x13a   :  { %v2148_v42 = vpop.f32.mrf.mxu0  ;;  %v1175_v55 = vadd.f32 %v1150_v18, %v814_v13  ;;  %v1572_v22 = vmul.f32 %v1535_v49, %v1476_v28  ;;  %v1555_v27 = vpop.permute.xlu0 %1554 }
 0x13b   :  { %v1477_v32 = vmax.f32 %v1461_v20, 0.0  ;;  %v1459_v58 = vadd.f32 %v2960_v2, %v1420_v1  ;;  %2170 = vmatprep.mubr.bf16.mxu1 %v1580_v60  ;;  %v1425_v11 = vadd.f32 %v2148_v42, %v1176_v53  ;;  %v1570_v10 = vmul.f32 %v1525_v8, %v1474_v17 }
 0x13c   :  { %v1396_v38 = vpop.f32.mrf.mxu0  ;;  %2171 = vmatmul.mubr.bf16.gmra.mxu1 %v1581_v54 }
 0x13d   :  { %v1475_v7 = vmax.f32 %v1459_v58, 0.0  ;;  %v1423_v62 = vadd.f32 %v1396_v38, %v1174_v26  ;;  %v1573_v0 = vmul.f32 %v1540_v61, %v1477_v32  ;;  %v1464_v4 = vadd.f32 %v2960_v2, %v1425_v11 }
 0x13e   :  { %v2149_v5 = vpop.f32.mrf.mxu0 }
 0x13f   :  { %v1571_v30 = vmul.f32 %v1530_v6, %v1475_v7  ;;  %v1462_v37 = vadd.f32 %v2960_v2, %v1423_v62  ;;  %v1426_v21 = vadd.f32 %v2149_v5, %v1177_v48  ;;  %v1583_v29 = vpack.c.bf16 %v1573_v0, %v1572_v22 }
 0x140   :  { %v1399_v14 = vpop.f32.mrf.mxu0  ;;  %v1480_v6 = vmax.f32 %v1464_v4, 0.0 }
 0x141   :  { %v1465_v12 = vadd.f32 %v2960_v2, %v1426_v21  ;;  %v1424_v15 = vadd.f32 %v1399_v14, %v1175_v55  ;;  %v1582_v3 = vpack.c.bf16 %v1571_v30, %v1570_v10  ;;  %v1478_v39 = vmax.f32 %v1462_v37, 0.0 }
 0x142   :  { %v1576_v8 = vmul.f32 %v1555_v27, %v1480_v6 }
 0x143   :  { %v1481_v24 = vmax.f32 %v1465_v12, 0.0  ;;  %v1463_v34 = vadd.f32 %v2960_v2, %v1424_v15  ;;  %2174 = vmatprep.mubr.bf16.mxu1 %v1582_v3  ;;  %v1574_v50 = vmul.f32 %v1545_v59, %v1478_v39 }
 0x144   :  { %2175 = vmatmul.mubr.bf16.gmra.mxu1 %v1583_v29 }
 0x145   :  { %v1479_v35 = vmax.f32 %v1463_v34, 0.0  ;;  %v1577_v16 = vmul.f32 %v1560_v33, %v1481_v24 }
 0x147   :  { %v1575_v47 = vmul.f32 %v1550_v45, %v1479_v35  ;;  %v1585_v52 = vpack.c.bf16 %v1577_v16, %v1576_v8 }
 0x149   :  { %v1584_v31 = vpack.c.bf16 %v1575_v47, %v1574_v50 }
 0x14b   :  { %2178 = vmatprep.mubr.bf16.mxu1 %v1584_v31 }
 0x14c   :  { %2179 = vmatmul.mubr.bf16.gmra.mxu1 %v1585_v52 }
 0x1f4   :  { %v2168_v2 = vpop.f32.mrf.mxu1 }
 0x1f5   :  { %v1700_v56 = vadd.f32 %v2168_v2, %v3022_v9 }
 0x1f6   :  { %v1691_v46 = vpop.f32.mrf.mxu1 }
 0x1f7   :  { %v1756_v41 = vmax.f32 %v1700_v56, 0.0  ;;  %v1692_v19 = vadd.f32 %v3022_v9, %v1691_v46 }
 0x1f8   :  { %v2169_v23 = vpop.f32.mrf.mxu1 }
 0x1f9   :  { %v1703_v43 = vadd.f32 %v2169_v23, %v3022_v9  ;;  %v1754_v20 = vmax.f32 %v1692_v19, 0.0 }
 0x1fa   :  { %v1694_v36 = vpop.f32.mrf.mxu1 }
 0x1fb   :  { %v1757_v40 = vmax.f32 %v1703_v43, 0.0  ;;  %v1695_v44 = vadd.f32 %v3022_v9, %v1694_v36 }
 0x1fc   :  { %v2172_v25 = vpop.f32.mrf.mxu1 }
 0x1fd   :  { %v1777_v63 = vmax.f32 %v1756_v41, %v1757_v40  ;;  %v1755_v51 = vmax.f32 %v1695_v44, 0.0  ;;  %v1716_v53 = vadd.f32 %v2172_v25, %v3022_v9 }
 0x1fe   :  { %v1707_v1 = vpop.f32.mrf.mxu1 }
 0x1ff   :  { %v1778_v13 = vrot.slane %v1777_v63, 4  ;;  %v1770_v61 = vmax.f32 %v1754_v20, %v1755_v51  ;;  %v1708_v60 = vadd.f32 %v3022_v9, %v1707_v1  ;;  %v1760_v32 = vmax.f32 %v1716_v53, 0.0  ;;  %v1997_v53 = vld [vmem:[%s3053_s6] ss:$0 sm:$0xff] }
 0x200   :  { %v2173_v42 = vpop.f32.mrf.mxu1 }
 0x201   :  { %v1719_v26 = vadd.f32 %v2173_v42, %v3022_v9  ;;  %v1779_v48 = vmax.f32 %v1777_v63, %v1778_v13  ;;  %v1771_v49 = vrot.slane %v1770_v61, 4  ;;  %v1758_v38 = vmax.f32 %v1708_v60, 0.0 }
 0x202   :  { %v1710_v18 = vpop.f32.mrf.mxu1 }
 0x203   :  { %v1761_v58 = vmax.f32 %v1719_v26, 0.0  ;;  %v1711_v54 = vadd.f32 %v3022_v9, %v1710_v18  ;;  %v1780_v0 = vrot.slane %v1779_v48, 2  ;;  %v1772_v30 = vmax.f32 %v1770_v61, %v1771_v49 }
 0x204   :  { %v2176_v17 = vpop.f32.mrf.mxu1 }
 0x205   :  { %v1791_v28 = vmax.f32 %v1760_v32, %v1761_v58  ;;  %v1759_v7 = vmax.f32 %v1711_v54, 0.0  ;;  %v1732_v11 = vadd.f32 %v2176_v17, %v3022_v9  ;;  %v1781_v3 = vmax.f32 %v1779_v48, %v1780_v0 }
 0x206   :  { %v1723_v62 = vpop.f32.mrf.mxu1  ;;  %v1773_v39 = vrot.slane %v1772_v30, 2 }
 0x207   :  { %v1792_v55 = vrot.slane %v1791_v28, 4  ;;  %v1784_v5 = vmax.f32 %v1758_v38, %v1759_v7  ;;  %v1724_v45 = vadd.f32 %v3022_v9, %v1723_v62  ;;  %v1764_v14 = vmax.f32 %v1732_v11, 0.0 }
 0x208   :  { %v2177_v37 = vpop.f32.mrf.mxu1  ;;  %v1782_v52 = vrot.slane %v1781_v3, 1  ;;  %v1774_v57 = vmax.f32 %v1772_v30, %v1773_v39 }
 0x209   :  { %v1785_v21 = vrot.slane %v1784_v5, 4  ;;  %v1735_v10 = vadd.f32 %v2177_v37, %v3022_v9  ;;  %v1793_v4 = vmax.f32 %v1791_v28, %v1792_v55  ;;  %v1762_v29 = vmax.f32 %v1724_v45, 0.0 }
 0x20a   :  { %v1726_v22 = vpop.f32.mrf.mxu1  ;;  %v1783_v25 = vmax.f32 %v1781_v3, %v1782_v52  ;;  %v1775_v20 = vrot.slane %v1774_v57, 1 }
 0x20b   :  { %v1786_v12 = vmax.f32 %v1784_v5, %v1785_v21  ;;  %v1765_v15 = vmax.f32 %v1735_v10, 0.0  ;;  %v1727_v59 = vadd.f32 %v3022_v9, %v1726_v22  ;;  %v1794_v50 = vrot.slane %v1793_v4, 2 }
 0x20c   :  { %v2180_v24 = vpop.f32.mrf.mxu1  ;;  %v1834_v48 = vmul.f32 %v1997_v53, %v1783_v25  ;;  %v1776_v49 = vmax.f32 %v1774_v57, %v1775_v20 }
 0x20d   :  { %v1787_v34 = vrot.slane %v1786_v12, 2  ;;  %v1805_v6 = vmax.f32 %v1764_v14, %v1765_v15  ;;  %v1763_v35 = vmax.f32 %v1727_v59, 0.0  ;;  %v1748_v8 = vadd.f32 %v2180_v24, %v3022_v9 }
 0x20e   :  { %v1739_v33 = vpop.f32.mrf.mxu1  ;;  %v1795_v41 = vmax.f32 %v1793_v4, %v1794_v50  ;;  %v1849_v0 = vrot.slane %v1834_v48, 7  ;;  %v1833_v30 = vmul.f32 %v1997_v53, %v1776_v49 }
 0x20f   :  { %v1788_v16 = vmax.f32 %v1786_v12, %v1787_v34  ;;  %v1806_v47 = vrot.slane %v1805_v6, 4  ;;  %v1798_v27 = vmax.f32 %v1762_v29, %v1763_v35  ;;  %v1740_v23 = vadd.f32 %v3022_v9, %v1739_v33 }
 0x210   :  { %v2181_v31 = vpop.f32.mrf.mxu1  ;;  %v1768_v44 = vmax.f32 %v1748_v8, 0.0  ;;  %v1796_v26 = vrot.slane %v1795_v41, 1  ;;  %v1851_v15 = vsel %vm1850_vm14, %v1849_v0, %v1833_v30 }
 0x211   :  { %v1807_v2 = vmax.f32 %v1805_v6, %v1806_v47  ;;  %v1799_v46 = vrot.slane %v1798_v27, 4  ;;  %v1789_v56 = vrot.slane %v1788_v16, 1  ;;  %v1751_v43 = vadd.f32 %v2181_v31, %v3022_v9 }
 0x212   :  { %v1742_v36 = vpop.f32.mrf.mxu1  ;;  %v1766_v61 = vmax.f32 %v1740_v23, 0.0  ;;  %v1797_v7 = vmax.f32 %v1795_v41, %v1796_v26 }
 0x213   :  { %v1808_v19 = vrot.slane %v1807_v2, 2  ;;  %v1800_v40 = vmax.f32 %v1798_v27, %v1799_v46  ;;  %v1769_v63 = vmax.f32 %v1751_v43, 0.0  ;;  %v1743_v51 = vadd.f32 %v3022_v9, %v1742_v36 }
 0x214   :  { %v1790_v13 = vmax.f32 %v1788_v16, %v1789_v56  ;;  %v1836_v14 = vmul.f32 %v1997_v53, %v1797_v7 }
 0x215   :  { %v1801_v1 = vrot.slane %v1800_v40, 2  ;;  %v1819_v42 = vmax.f32 %v1768_v44, %v1769_v63  ;;  %v1767_v60 = vmax.f32 %v1743_v51, 0.0  ;;  %v1809_v18 = vmax.f32 %v1807_v2, %v1808_v19  ;;  %v1998_v2 = vld [vmem:[#allocation2] ss:$0 sm:$0xff] }
 0x216   :  { %v1835_v9 = vmul.f32 %v1997_v53, %v1790_v13  ;;  %v1855_v34 = vrot.slane %v1836_v14, 5 }
 0x217   :  { %v1802_v32 = vmax.f32 %v1800_v40, %v1801_v1  ;;  %v1820_v58 = vrot.slane %v1819_v42, 4  ;;  %v1812_v54 = vmax.f32 %v1766_v61, %v1767_v60  ;;  %v1810_v11 = vrot.slane %v1809_v18, 1 }
 0x218   :  { %v1852_v37 = vrot.slane %v1835_v9, 6 }
 0x219   :  { %v1803_v17 = vrot.slane %v1802_v32, 1  ;;  %v1821_v38 = vmax.f32 %v1819_v42, %v1820_v58  ;;  %v1813_v28 = vrot.slane %v1812_v54, 4  ;;  %v1811_v22 = vmax.f32 %v1809_v18, %v1810_v11 }
 0x21a   :  { %v1854_v24 = vsel %vm1853_vm15, %v1852_v37, %v1851_v15 }
 0x21b   :  { %v1804_v62 = vmax.f32 %v1802_v32, %v1803_v17  ;;  %v1822_v55 = vrot.slane %v1821_v38, 2  ;;  %v1814_v5 = vmax.f32 %v1812_v54, %v1813_v28  ;;  %v1838_v29 = vmul.f32 %v1997_v53, %v1811_v22 }
 0x21c   :  { %v1857_v33 = vsel %vm1856_vm0, %v1855_v34, %v1854_v24 }
 0x21d   :  { %v1837_v21 = vmul.f32 %v1997_v53, %v1804_v62  ;;  %v1823_v45 = vmax.f32 %v1821_v38, %v1822_v55  ;;  %v1815_v10 = vrot.slane %v1814_v5, 2  ;;  %v1861_v47 = vrot.slane %v1838_v29, 3 }
 0x21f   :  { %v1824_v4 = vrot.slane %v1823_v45, 1  ;;  %v1816_v12 = vmax.f32 %v1814_v5, %v1815_v10  ;;  %v1858_v59 = vrot.slane %v1837_v21, 4 }
 0x221   :  { %v1817_v3 = vrot.slane %v1816_v12, 1  ;;  %v1825_v39 = vmax.f32 %v1823_v45, %v1824_v4  ;;  %v1860_v16 = vsel %vm1859_vm1, %v1858_v59, %v1857_v33 }
 0x222   :  { %v1863_v8 = vsel %vm1862_vm2, %v1861_v47, %v1860_v16 }
 0x223   :  { %v1818_v6 = vmax.f32 %v1816_v12, %v1817_v3  ;;  %v1840_v35 = vmul.f32 %v1997_v53, %v1825_v39 }
 0x225   :  { %v1839_v50 = vmul.f32 %v1997_v53, %v1818_v6  ;;  %v1867_v31 = vrot.slane %v1840_v35, 1 }
 0x227   :  { %v1864_v27 = vrot.slane %v1839_v50, 2 }
 0x229   :  { %v1866_v52 = vsel %vm1865_vm3, %v1864_v27, %v1863_v8 }
 0x22a   :  { %v1869_v57 = vsel %vm1868_vm4, %v1867_v31, %v1866_v52 }
 0x22b   :  { %1871 = vadd.xlane.f32.xlu0 %v1869_v57 }
 0x2b4   :  { %v1872_v46 = vpop.xlane.xlu0 %1871 }
 0x2b5   :  { %v1880_v56 = vadd.f32 %v1998_v2, %v1872_v46 }
 0x2b7   :  { %1882 = vst.msk [vmem:[%s3054_s8] sm:$0xff] %vm1881_vm5, %v1880_v56 }

</bundles_post_ra>
